<compile_context>
chip_gen: v5e
topology: v5e:2x2
jax: 0.10.0
libtpu: 0.0.40
codegen_flags: <defaults>
</compile_context>

<pallas_src>
import functools

import jax
import jax.numpy as jnp
import numpy as np
from jax.experimental import pallas as pl
from jax.experimental.pallas import tpu as pltpu


def _round_up(a: int, m: int) -> int:
    return ((a + m - 1) // m) * m


def _vmem_capacity_bytes() -> int:
    """Per-core VMEM capacity; conservative fallback if the query fails."""
    try:
        return int(pltpu.get_tpu_info().vmem_capacity_bytes)
    except Exception:
        return 64 * 1024 * 1024  # v7x-sized, safe everywhere


def _derive_row_block(R, C, c_out, S, order, Vp, vmem_cap):
    """Pick the row block RB from an explicit VMEM budget and a grid-step target."""
    # Bytes resident independent of RB: adjacency (single-buffered, bf16) + weights.
    const_bytes = S * Vp * Vp * 2 + (c_out * C + S * c_out * order * C) * 2
    budget = int(vmem_cap * 0.7) - const_bytes
    # Per-row VMEM bytes of one grid step:
    #   x block (2 bufs, bf16) + out block (2 bufs, f32) + diffusion slab
    #   (1 scratch buf, bf16) + live temporaries (xk bf16, f32 matmul result).
    per_row = Vp * (2 * C * 2 + 2 * c_out * 4 + order * C * 2 + C * 2 + c_out * 4)
    if budget > per_row * 8:
        rb_cap = max(8, (budget // per_row) // 8 * 8)
    else:
        rb_cap = 8
    # Target ~8 grid steps (>=2 where the row count allows) so DMA is hidden
    # behind compute and the "parallel" row axis feeds both v7x TensorCores.
    steps = min(8, max(2, -(-R // 8)))
    rb_steps = _round_up(-(-R // steps), 8)
    RB = max(8, min(rb_cap, rb_steps))
    R_pad = _round_up(R, RB)
    return RB, R_pad


def _gcn_kernel(x_ref, adj_ref, w0_ref, ws_ref, o_ref, slab_ref, *,
                support_len, order, c_in):
    """Fused diffusion-GCN forward for one row block.

    x_ref   : (C, RB, Vp)          bf16 input block, rows = flattened (batch, seq)
    adj_ref : (S, Vp, Vp)          bf16 supports (constant across grid steps)
    w0_ref  : (c_out, C)           bf16 1x1-conv weights for the identity block
    ws_ref  : (S, c_out, order*C)  bf16 1x1-conv weights, batched per support
    o_ref   : (c_out, RB, Vp)      f32 output block (accumulated in place)
    slab_ref: (order*C, RB, Vp)    bf16 VMEM scratch holding one support's states
    """
    # Identity (j = 0) term of the 1x1 conv, stored straight into the output.
    o_ref[...] = jnp.einsum('oc,crv->orv', w0_ref[...], x_ref[...],
                            preferred_element_type=jnp.float32)

    for s in range(support_len):
        a = adj_ref[s]                      # (Vp, Vp), bf16
        xk = x_ref[...]                     # cheap re-read; keeps x's live range short
        for k in range(order):
            # Diffusion step: contract over the node axis (lanes) on the MXU.
            xk = jnp.einsum('crv,vw->crw', xk, a,
                            preferred_element_type=jnp.float32
                            ).astype(slab_ref.dtype)
            slab_ref[k * c_in:(k + 1) * c_in, :, :] = xk
        # One wide-K (order*C) conv matmul per support, accumulated in place.
        o_ref[...] += jnp.einsum('ok,krv->orv', ws_ref[s], slab_ref[...],
                                 preferred_element_type=jnp.float32)


@functools.partial(jax.jit, static_argnames=("order",))
def gcn_forward(x, adj_stack, W, b, *, order):
    """x: (N, C, V, L); adj_stack: (S, V, V); W: (c_out, (order*S+1)*C); b: (c_out,)."""
    N, C, V, L = x.shape
    S = adj_stack.shape[0]
    c_out, c_total = W.shape
    J = order * S + 1
    assert c_total == J * C

    R = N * L
    Vp = _round_up(V, 128)
    vmem_cap = _vmem_capacity_bytes()
    RB, R_pad = _derive_row_block(R, C, c_out, S, order, Vp, vmem_cap)
    vmem_limit = int(min(vmem_cap * 0.85, 128 * 1024 * 1024))

    # ---- wrapper-side re-layout (plain XLA ops, fused) ----
    # x: (N, C, V, L) -> (C, N, L, V) -> (C, R, V); bf16; pad rows & nodes with 0.
    xr = jnp.transpose(x, (1, 0, 3, 2)).reshape(C, R, V).astype(jnp.bfloat16)
    xr = jnp.pad(xr, ((0, 0), (0, R_pad - R), (0, Vp - V)))
    adj_p = jnp.pad(adj_stack.astype(jnp.bfloat16),
                    ((0, 0), (0, Vp - V), (0, Vp - V)))
    # W (c_out, J*C): block 0 is the identity term, blocks 1.. are (support, order).
    w_all = W.astype(jnp.bfloat16).reshape(c_out, J, C)
    w0 = w_all[:, 0, :]                                           # (c_out, C)
    ws = jnp.transpose(w_all[:, 1:, :].reshape(c_out, S, order, C),
                       (1, 0, 2, 3)).reshape(S, c_out, order * C)  # (S, c_out, order*C)

    kernel = functools.partial(_gcn_kernel, support_len=S, order=order, c_in=C)

    out_pad = pl.pallas_call(
        kernel,
        out_shape=jax.ShapeDtypeStruct((c_out, R_pad, Vp), jnp.float32),
        grid_spec=pltpu.PrefetchScalarGridSpec(
            num_scalar_prefetch=0,
            grid=(R_pad // RB,),
            in_specs=[
                pl.BlockSpec((C, RB, Vp), lambda i: (0, i, 0)),
                pl.BlockSpec((S, Vp, Vp), lambda i: (0, 0, 0),
                             pipeline_mode=pl.Buffered(1)),
                pl.BlockSpec((c_out, C), lambda i: (0, 0),
                             pipeline_mode=pl.Buffered(1)),
                pl.BlockSpec((S, c_out, order * C), lambda i: (0, 0, 0),
                             pipeline_mode=pl.Buffered(1)),
            ],
            out_specs=pl.BlockSpec((c_out, RB, Vp), lambda i: (0, i, 0)),
            scratch_shapes=[pltpu.VMEM((order * C, RB, Vp), jnp.bfloat16)],
        ),
        compiler_params=pltpu.CompilerParams(
            dimension_semantics=("parallel",),
            vmem_limit_bytes=vmem_limit),
    )(xr, adj_p, w0, ws)

    # ---- undo layout, drop padding, add bias (fused with the transpose) ----
    out = out_pad[:, :R, :V].reshape(c_out, N, L, V)
    out = jnp.transpose(out, (1, 0, 3, 2))            # (N, c_out, V, L)
    return out + b.reshape(1, c_out, 1, 1).astype(jnp.float32)


def gcn_reference(x, adj_stack, W, b, *, order):
    """Plain-JAX f32 reference matching the PyTorch GCN.forward (eval mode)."""
    out = [x]
    for s in range(adj_stack.shape[0]):
        a = adj_stack[s]
        x1 = jnp.einsum('ncvl,vw->ncwl', x, a)
        out.append(x1)
        for _k in range(2, order + 1):
            x2 = jnp.einsum('ncvl,vw->ncwl', x1, a)
            out.append(x2)
            x1 = x2
    h = jnp.concatenate(out, axis=1)
    return jnp.einsum('oc,ncvl->novl', W, h) + b.reshape(1, -1, 1, 1)


if __name__ == "__main__":
    # Small shapes consistent with the module's forward.
    N, C_IN, V, L = 2, 4, 16, 8
    SUPPORT_LEN, ORDER = 3, 2
    C_OUT = 8
    C_TOTAL = (ORDER * SUPPORT_LEN + 1) * C_IN

    key = jax.random.PRNGKey(0)
    kx, ka, kw, kb = jax.random.split(key, 4)

    x = jax.random.normal(kx, (N, C_IN, V, L), dtype=jnp.float32)

    # Row-normalized random adjacency matrices (like diffusion supports).
    adj_raw = jax.random.uniform(ka, (SUPPORT_LEN, V, V), dtype=jnp.float32)
    adj_stack = adj_raw / jnp.sum(adj_raw, axis=-1, keepdims=True)

    # 1x1-conv parameters: Conv2d(c_total, c_out, kernel=(1,1)) -> dense (c_out, c_total).
    W = 0.1 * jax.random.normal(kw, (C_OUT, C_TOTAL), dtype=jnp.float32)
    b = 0.1 * jax.random.normal(kb, (C_OUT,), dtype=jnp.float32)

    out = gcn_forward(x, adj_stack, W, b, order=ORDER)
    out = jax.block_until_ready(out)

    ref = gcn_reference(x, adj_stack, W, b, order=ORDER)
    # bf16 operands with f32 accumulation -> loosened tolerance vs the f32 reference.
    np.testing.assert_allclose(np.asarray(out), np.asarray(ref),
                               rtol=2e-2, atol=2e-2)

    print("KERNEL_OK")
</pallas_src>

<mosaic_0001>
module attributes {stable_mosaic.version = 11 : i64} {
  func.func @_gcn_kernel(%arg0: i32, %arg1: memref<4x8x128xbf16, #tpu.memory_space<vmem>>, %arg2: memref<3x128x128xbf16, #tpu.memory_space<vmem>>, %arg3: memref<8x4xbf16, #tpu.memory_space<vmem>>, %arg4: memref<3x8x8xbf16, #tpu.memory_space<vmem>>, %arg5: memref<8x8x128xf32, #tpu.memory_space<vmem>>, %arg6: memref<8x8x128xbf16, #tpu.memory_space<vmem>>) attributes {dimension_semantics = [#tpu.dimension_semantics<parallel>], iteration_bounds = array<i64: 2>, scalar_prefetch = 0 : i64, scratch_operands = 1 : i64, tpu.core_type = #tpu.core_type<tc>, window_params = [{transform_indices = @transform_0, window_bounds = array<i64: 4, 8, 128>}, {pipeline_mode = #tpu.pipeline_mode<synchronous>, transform_indices = @transform_1, window_bounds = array<i64: 3, 128, 128>}, {pipeline_mode = #tpu.pipeline_mode<synchronous>, transform_indices = @transform_2, window_bounds = array<i64: 8, 4>}, {pipeline_mode = #tpu.pipeline_mode<synchronous>, transform_indices = @transform_3, window_bounds = array<i64: 3, 8, 8>}, {transform_indices = @transform_4, window_bounds = array<i64: 8, 8, 128>}]} {
    %c0 = arith.constant 0 : index
    %c0_0 = arith.constant 0 : index
    %0 = vector.load %arg3[%c0, %c0_0] : memref<8x4xbf16, #tpu.memory_space<vmem>>, vector<8x4xbf16>
    %c0_1 = arith.constant 0 : index
    %c0_2 = arith.constant 0 : index
    %c0_3 = arith.constant 0 : index
    %1 = vector.load %arg1[%c0_1, %c0_2, %c0_3] : memref<4x8x128xbf16, #tpu.memory_space<vmem>>, vector<4x8x128xbf16>
    "tpu.trace_start"() <{level = 10 : i32, message = "oc,crv->orv"}> : () -> ()
    %cst = arith.constant dense<0.000000e+00> : vector<8x8x128xf32>
    %2 = tpu.matmul %0, %1, %cst {dimension_numbers = #tpu.dot_dimension_numbers<[1], [0], [0], [1, 2], [0, 0, 1, 1, 1, 2], [], []>} : vector<8x4xbf16>, vector<4x8x128xbf16>, vector<8x8x128xf32> -> vector<8x8x128xf32>
    "tpu.trace_stop"() : () -> ()
    %c0_4 = arith.constant 0 : index
    %c0_5 = arith.constant 0 : index
    %c0_6 = arith.constant 0 : index
    %3 = vector.load %arg5[%c0_4, %c0_5, %c0_6] : memref<8x8x128xf32, #tpu.memory_space<vmem>>, vector<8x8x128xf32>
    tpu.vector_store %arg5[%c0_4, %c0_5, %c0_6], %2 {strides = array<i32>} : memref<8x8x128xf32, #tpu.memory_space<vmem>>, vector<8x8x128xf32>,
    %c0_7 = arith.constant 0 : index
    %c0_8 = arith.constant 0 : index
    %c0_9 = arith.constant 0 : index
    %4 = vector.load %arg2[%c0_7, %c0_8, %c0_9] : memref<3x128x128xbf16, #tpu.memory_space<vmem>>, vector<1x128x128xbf16>
    %5 = vector.shape_cast %4 : vector<1x128x128xbf16> to vector<128x128xbf16>
    %c0_10 = arith.constant 0 : index
    %c0_11 = arith.constant 0 : index
    %c0_12 = arith.constant 0 : index
    %6 = vector.load %arg1[%c0_10, %c0_11, %c0_12] : memref<4x8x128xbf16, #tpu.memory_space<vmem>>, vector<4x8x128xbf16>
    "tpu.trace_start"() <{level = 10 : i32, message = "crv,vw->crw"}> : () -> ()
    %cst_13 = arith.constant dense<0.000000e+00> : vector<4x8x128xf32>
    %7 = tpu.matmul %6, %5, %cst_13 {dimension_numbers = #tpu.dot_dimension_numbers<[2], [0], [0, 1], [1], [0, 0, 0, 1, 1, 1], [], []>} : vector<4x8x128xbf16>, vector<128x128xbf16>, vector<4x8x128xf32> -> vector<4x8x128xf32>
    "tpu.trace_stop"() : () -> ()
    %8 = arith.truncf %7 : vector<4x8x128xf32> to vector<4x8x128xbf16>
    %c0_14 = arith.constant 0 : index
    %c0_15 = arith.constant 0 : index
    %c0_16 = arith.constant 0 : index
    %9 = vector.load %arg6[%c0_14, %c0_15, %c0_16] : memref<8x8x128xbf16, #tpu.memory_space<vmem>>, vector<4x8x128xbf16>
    tpu.vector_store %arg6[%c0_14, %c0_15, %c0_16], %8 {strides = array<i32>} : memref<8x8x128xbf16, #tpu.memory_space<vmem>>, vector<4x8x128xbf16>,
    "tpu.trace_start"() <{level = 10 : i32, message = "crv,vw->crw"}> : () -> ()
    %cst_17 = arith.constant dense<0.000000e+00> : vector<4x8x128xf32>
    %10 = tpu.matmul %8, %5, %cst_17 {dimension_numbers = #tpu.dot_dimension_numbers<[2], [0], [0, 1], [1], [0, 0, 0, 1, 1, 1], [], []>} : vector<4x8x128xbf16>, vector<128x128xbf16>, vector<4x8x128xf32> -> vector<4x8x128xf32>
    "tpu.trace_stop"() : () -> ()
    %11 = arith.truncf %10 : vector<4x8x128xf32> to vector<4x8x128xbf16>
    %c4 = arith.constant 4 : index
    %c0_18 = arith.constant 0 : index
    %c0_19 = arith.constant 0 : index
    %12 = vector.load %arg6[%c4, %c0_18, %c0_19] : memref<8x8x128xbf16, #tpu.memory_space<vmem>>, vector<4x8x128xbf16>
    tpu.vector_store %arg6[%c4, %c0_18, %c0_19], %11 {strides = array<i32>} : memref<8x8x128xbf16, #tpu.memory_space<vmem>>, vector<4x8x128xbf16>,
    %c0_20 = arith.constant 0 : index
    %c0_21 = arith.constant 0 : index
    %c0_22 = arith.constant 0 : index
    %13 = vector.load %arg5[%c0_20, %c0_21, %c0_22] : memref<8x8x128xf32, #tpu.memory_space<vmem>>, vector<8x8x128xf32>
    %c0_23 = arith.constant 0 : index
    %c0_24 = arith.constant 0 : index
    %c0_25 = arith.constant 0 : index
    %14 = vector.load %arg4[%c0_23, %c0_24, %c0_25] : memref<3x8x8xbf16, #tpu.memory_space<vmem>>, vector<1x8x8xbf16>
    %15 = vector.shape_cast %14 : vector<1x8x8xbf16> to vector<8x8xbf16>
    %c0_26 = arith.constant 0 : index
    %c0_27 = arith.constant 0 : index
    %c0_28 = arith.constant 0 : index
    %16 = vector.load %arg6[%c0_26, %c0_27, %c0_28] : memref<8x8x128xbf16, #tpu.memory_space<vmem>>, vector<8x8x128xbf16>
    "tpu.trace_start"() <{level = 10 : i32, message = "ok,krv->orv"}> : () -> ()
    %cst_29 = arith.constant dense<0.000000e+00> : vector<8x8x128xf32>
    %17 = tpu.matmul %15, %16, %cst_29 {dimension_numbers = #tpu.dot_dimension_numbers<[1], [0], [0], [1, 2], [0, 0, 1, 1, 1, 2], [], []>} : vector<8x8xbf16>, vector<8x8x128xbf16>, vector<8x8x128xf32> -> vector<8x8x128xf32>
    "tpu.trace_stop"() : () -> ()
    %18 = arith.addf %13, %17 : vector<8x8x128xf32>
    %c0_30 = arith.constant 0 : index
    %c0_31 = arith.constant 0 : index
    %c0_32 = arith.constant 0 : index
    %19 = vector.load %arg5[%c0_30, %c0_31, %c0_32] : memref<8x8x128xf32, #tpu.memory_space<vmem>>, vector<8x8x128xf32>
    tpu.vector_store %arg5[%c0_30, %c0_31, %c0_32], %18 {strides = array<i32>} : memref<8x8x128xf32, #tpu.memory_space<vmem>>, vector<8x8x128xf32>,
    %c1 = arith.constant 1 : index
    %c0_33 = arith.constant 0 : index
    %c0_34 = arith.constant 0 : index
    %20 = vector.load %arg2[%c1, %c0_33, %c0_34] : memref<3x128x128xbf16, #tpu.memory_space<vmem>>, vector<1x128x128xbf16>
    %21 = vector.shape_cast %20 : vector<1x128x128xbf16> to vector<128x128xbf16>
    %c0_35 = arith.constant 0 : index
    %c0_36 = arith.constant 0 : index
    %c0_37 = arith.constant 0 : index
    %22 = vector.load %arg1[%c0_35, %c0_36, %c0_37] : memref<4x8x128xbf16, #tpu.memory_space<vmem>>, vector<4x8x128xbf16>
    "tpu.trace_start"() <{level = 10 : i32, message = "crv,vw->crw"}> : () -> ()
    %cst_38 = arith.constant dense<0.000000e+00> : vector<4x8x128xf32>
    %23 = tpu.matmul %22, %21, %cst_38 {dimension_numbers = #tpu.dot_dimension_numbers<[2], [0], [0, 1], [1], [0, 0, 0, 1, 1, 1], [], []>} : vector<4x8x128xbf16>, vector<128x128xbf16>, vector<4x8x128xf32> -> vector<4x8x128xf32>
    "tpu.trace_stop"() : () -> ()
    %24 = arith.truncf %23 : vector<4x8x128xf32> to vector<4x8x128xbf16>
    %c0_39 = arith.constant 0 : index
    %c0_40 = arith.constant 0 : index
    %c0_41 = arith.constant 0 : index
    %25 = vector.load %arg6[%c0_39, %c0_40, %c0_41] : memref<8x8x128xbf16, #tpu.memory_space<vmem>>, vector<4x8x128xbf16>
    tpu.vector_store %arg6[%c0_39, %c0_40, %c0_41], %24 {strides = array<i32>} : memref<8x8x128xbf16, #tpu.memory_space<vmem>>, vector<4x8x128xbf16>,
    "tpu.trace_start"() <{level = 10 : i32, message = "crv,vw->crw"}> : () -> ()
    %cst_42 = arith.constant dense<0.000000e+00> : vector<4x8x128xf32>
    %26 = tpu.matmul %24, %21, %cst_42 {dimension_numbers = #tpu.dot_dimension_numbers<[2], [0], [0, 1], [1], [0, 0, 0, 1, 1, 1], [], []>} : vector<4x8x128xbf16>, vector<128x128xbf16>, vector<4x8x128xf32> -> vector<4x8x128xf32>
    "tpu.trace_stop"() : () -> ()
    %27 = arith.truncf %26 : vector<4x8x128xf32> to vector<4x8x128xbf16>
    %c4_43 = arith.constant 4 : index
    %c0_44 = arith.constant 0 : index
    %c0_45 = arith.constant 0 : index
    %28 = vector.load %arg6[%c4_43, %c0_44, %c0_45] : memref<8x8x128xbf16, #tpu.memory_space<vmem>>, vector<4x8x128xbf16>
    tpu.vector_store %arg6[%c4_43, %c0_44, %c0_45], %27 {strides = array<i32>} : memref<8x8x128xbf16, #tpu.memory_space<vmem>>, vector<4x8x128xbf16>,
    %c0_46 = arith.constant 0 : index
    %c0_47 = arith.constant 0 : index
    %c0_48 = arith.constant 0 : index
    %29 = vector.load %arg5[%c0_46, %c0_47, %c0_48] : memref<8x8x128xf32, #tpu.memory_space<vmem>>, vector<8x8x128xf32>
    %c1_49 = arith.constant 1 : index
    %c0_50 = arith.constant 0 : index
    %c0_51 = arith.constant 0 : index
    %30 = vector.load %arg4[%c1_49, %c0_50, %c0_51] : memref<3x8x8xbf16, #tpu.memory_space<vmem>>, vector<1x8x8xbf16>
    %31 = vector.shape_cast %30 : vector<1x8x8xbf16> to vector<8x8xbf16>
    %c0_52 = arith.constant 0 : index
    %c0_53 = arith.constant 0 : index
    %c0_54 = arith.constant 0 : index
    %32 = vector.load %arg6[%c0_52, %c0_53, %c0_54] : memref<8x8x128xbf16, #tpu.memory_space<vmem>>, vector<8x8x128xbf16>
    "tpu.trace_start"() <{level = 10 : i32, message = "ok,krv->orv"}> : () -> ()
    %cst_55 = arith.constant dense<0.000000e+00> : vector<8x8x128xf32>
    %33 = tpu.matmul %31, %32, %cst_55 {dimension_numbers = #tpu.dot_dimension_numbers<[1], [0], [0], [1, 2], [0, 0, 1, 1, 1, 2], [], []>} : vector<8x8xbf16>, vector<8x8x128xbf16>, vector<8x8x128xf32> -> vector<8x8x128xf32>
    "tpu.trace_stop"() : () -> ()
    %34 = arith.addf %29, %33 : vector<8x8x128xf32>
    %c0_56 = arith.constant 0 : index
    %c0_57 = arith.constant 0 : index
    %c0_58 = arith.constant 0 : index
    %35 = vector.load %arg5[%c0_56, %c0_57, %c0_58] : memref<8x8x128xf32, #tpu.memory_space<vmem>>, vector<8x8x128xf32>
    tpu.vector_store %arg5[%c0_56, %c0_57, %c0_58], %34 {strides = array<i32>} : memref<8x8x128xf32, #tpu.memory_space<vmem>>, vector<8x8x128xf32>,
    %c2 = arith.constant 2 : index
    %c0_59 = arith.constant 0 : index
    %c0_60 = arith.constant 0 : index
    %36 = vector.load %arg2[%c2, %c0_59, %c0_60] : memref<3x128x128xbf16, #tpu.memory_space<vmem>>, vector<1x128x128xbf16>
    %37 = vector.shape_cast %36 : vector<1x128x128xbf16> to vector<128x128xbf16>
    %c0_61 = arith.constant 0 : index
    %c0_62 = arith.constant 0 : index
    %c0_63 = arith.constant 0 : index
    %38 = vector.load %arg1[%c0_61, %c0_62, %c0_63] : memref<4x8x128xbf16, #tpu.memory_space<vmem>>, vector<4x8x128xbf16>
    "tpu.trace_start"() <{level = 10 : i32, message = "crv,vw->crw"}> : () -> ()
    %cst_64 = arith.constant dense<0.000000e+00> : vector<4x8x128xf32>
    %39 = tpu.matmul %38, %37, %cst_64 {dimension_numbers = #tpu.dot_dimension_numbers<[2], [0], [0, 1], [1], [0, 0, 0, 1, 1, 1], [], []>} : vector<4x8x128xbf16>, vector<128x128xbf16>, vector<4x8x128xf32> -> vector<4x8x128xf32>
    "tpu.trace_stop"() : () -> ()
    %40 = arith.truncf %39 : vector<4x8x128xf32> to vector<4x8x128xbf16>
    %c0_65 = arith.constant 0 : index
    %c0_66 = arith.constant 0 : index
    %c0_67 = arith.constant 0 : index
    %41 = vector.load %arg6[%c0_65, %c0_66, %c0_67] : memref<8x8x128xbf16, #tpu.memory_space<vmem>>, vector<4x8x128xbf16>
    tpu.vector_store %arg6[%c0_65, %c0_66, %c0_67], %40 {strides = array<i32>} : memref<8x8x128xbf16, #tpu.memory_space<vmem>>, vector<4x8x128xbf16>,
    "tpu.trace_start"() <{level = 10 : i32, message = "crv,vw->crw"}> : () -> ()
    %cst_68 = arith.constant dense<0.000000e+00> : vector<4x8x128xf32>
    %42 = tpu.matmul %40, %37, %cst_68 {dimension_numbers = #tpu.dot_dimension_numbers<[2], [0], [0, 1], [1], [0, 0, 0, 1, 1, 1], [], []>} : vector<4x8x128xbf16>, vector<128x128xbf16>, vector<4x8x128xf32> -> vector<4x8x128xf32>
    "tpu.trace_stop"() : () -> ()
    %43 = arith.truncf %42 : vector<4x8x128xf32> to vector<4x8x128xbf16>
    %c4_69 = arith.constant 4 : index
    %c0_70 = arith.constant 0 : index
    %c0_71 = arith.constant 0 : index
    %44 = vector.load %arg6[%c4_69, %c0_70, %c0_71] : memref<8x8x128xbf16, #tpu.memory_space<vmem>>, vector<4x8x128xbf16>
    tpu.vector_store %arg6[%c4_69, %c0_70, %c0_71], %43 {strides = array<i32>} : memref<8x8x128xbf16, #tpu.memory_space<vmem>>, vector<4x8x128xbf16>,
    %c0_72 = arith.constant 0 : index
    %c0_73 = arith.constant 0 : index
    %c0_74 = arith.constant 0 : index
    %45 = vector.load %arg5[%c0_72, %c0_73, %c0_74] : memref<8x8x128xf32, #tpu.memory_space<vmem>>, vector<8x8x128xf32>
    %c2_75 = arith.constant 2 : index
    %c0_76 = arith.constant 0 : index
    %c0_77 = arith.constant 0 : index
    %46 = vector.load %arg4[%c2_75, %c0_76, %c0_77] : memref<3x8x8xbf16, #tpu.memory_space<vmem>>, vector<1x8x8xbf16>
    %47 = vector.shape_cast %46 : vector<1x8x8xbf16> to vector<8x8xbf16>
    %c0_78 = arith.constant 0 : index
    %c0_79 = arith.constant 0 : index
    %c0_80 = arith.constant 0 : index
    %48 = vector.load %arg6[%c0_78, %c0_79, %c0_80] : memref<8x8x128xbf16, #tpu.memory_space<vmem>>, vector<8x8x128xbf16>
    "tpu.trace_start"() <{level = 10 : i32, message = "ok,krv->orv"}> : () -> ()
    %cst_81 = arith.constant dense<0.000000e+00> : vector<8x8x128xf32>
    %49 = tpu.matmul %47, %48, %cst_81 {dimension_numbers = #tpu.dot_dimension_numbers<[1], [0], [0], [1, 2], [0, 0, 1, 1, 1, 2], [], []>} : vector<8x8xbf16>, vector<8x8x128xbf16>, vector<8x8x128xf32> -> vector<8x8x128xf32>
    "tpu.trace_stop"() : () -> ()
    %50 = arith.addf %45, %49 : vector<8x8x128xf32>
    %c0_82 = arith.constant 0 : index
    %c0_83 = arith.constant 0 : index
    %c0_84 = arith.constant 0 : index
    %51 = vector.load %arg5[%c0_82, %c0_83, %c0_84] : memref<8x8x128xf32, #tpu.memory_space<vmem>>, vector<8x8x128xf32>
    tpu.vector_store %arg5[%c0_82, %c0_83, %c0_84], %50 {strides = array<i32>} : memref<8x8x128xf32, #tpu.memory_space<vmem>>, vector<8x8x128xf32>,
    return
  }
  func.func @transform_0(%arg0: i32) -> (i32, i32, i32) {
    %c0_i32 = arith.constant 0 : i32
    %c0_i32_0 = arith.constant 0 : i32
    %c0_i32_1 = arith.constant 0 : i32
    return %c0_i32, %arg0, %c0_i32_0 : i32, i32, i32
  }
  func.func @transform_1(%arg0: i32) -> (i32, i32, i32) {
    %c0_i32 = arith.constant 0 : i32
    %c0_i32_0 = arith.constant 0 : i32
    %c0_i32_1 = arith.constant 0 : i32
    %c0_i32_2 = arith.constant 0 : i32
    return %c0_i32, %c0_i32_0, %c0_i32_1 : i32, i32, i32
  }
  func.func @transform_2(%arg0: i32) -> (i32, i32) {
    %c0_i32 = arith.constant 0 : i32
    %c0_i32_0 = arith.constant 0 : i32
    %c0_i32_1 = arith.constant 0 : i32
    return %c0_i32, %c0_i32_0 : i32, i32
  }
  func.func @transform_3(%arg0: i32) -> (i32, i32, i32) {
    %c0_i32 = arith.constant 0 : i32
    %c0_i32_0 = arith.constant 0 : i32
    %c0_i32_1 = arith.constant 0 : i32
    %c0_i32_2 = arith.constant 0 : i32
    return %c0_i32, %c0_i32_0, %c0_i32_1 : i32, i32, i32
  }
  func.func @transform_4(%arg0: i32) -> (i32, i32, i32) {
    %c0_i32 = arith.constant 0 : i32
    %c0_i32_0 = arith.constant 0 : i32
    %c0_i32_1 = arith.constant 0 : i32
    return %c0_i32, %arg0, %c0_i32_0 : i32, i32, i32
  }
}

</mosaic_0001>

<bundles_post_ra>
// kernel: gcn_forward.1
= control target key start
LH: loop header
LB: loop body
LE: loop exit
PB: predicated region body
PF: predicated region fallthrough
CT: control target
= control target key end

     0   :  { %s2629_s15 = smov 0   ;;  %s2631_s16 = smov 0   ;;  %s3232_s0 = inlined_call_operand.vmem [shape: bf16[4,16,128], index: 0, kind: input, shape index: {}]   ;;  %s3233_s1 = inlined_call_operand.vmem [shape: bf16[3,128,128], index: 1, kind: input, shape index: {}]   ;;  %s3234_s2 = inlined_call_operand.vmem [shape: bf16[8,4], index: 2, kind: input, shape index: {}]   ;;  %s3235_s3 = inlined_call_operand.vmem [shape: bf16[3,8,8], index: 3, kind: input, shape index: {}]   ;;  %s3236_s4 = inlined_call_operand.vmem [shape: f32[8,16,128], index: 4, kind: output, shape index: {}]  }
   0x1   :  { %s2633_s17 = smov 0  }
   0x2 LB: > { %s2255_s18 = sadd.s32 4294967295, %s2599_s17   ;;  %s2646_s19 = sadd.s32 1, %s2599_s17   ;;  %s2599_s17 = sphi %s2633_s17, %s3240_s17   ;;  %s2595_s16 = sphi %s2631_s16, %s3239_s16   ;;  %s2591_s15 = sphi %s2629_s15, %s3238_s15  }
   0x3   : > { %s18_s20 = ssub.s32 %s2599_s17, %s2646_s19  ;;  %s21_s21 = sadd.s32 1, %s2595_s16 }
   0x4   : > { %p19_p0 = scmp.eq.s32.totalorder %s18_s20, 0  ;;  %p28_p1 = scmp.ne.s32.totalorder %s2595_s16, %s2591_s15 }
   0x5   : > { %p29_p2 = scmp.eq.s32.totalorder %s2599_s17, 0  ;;  %p121_p3 = scmp.eq.s32.totalorder %s2255_s18, 1 }
   0x6   : > { %s2657_s22 = scalar_select %p19_p0, %s2595_s16, %s21_s21  }
   0x7   : > { %p30_p4 = por %p29_p2, %p28_p1  ;;  %p2659_p5 = por %p121_p3, %p28_p1 }
   0x8   : > { %p2258_p6 = scmp.ge.s32.totalorder %s2599_s17, 2 }
   0xa   : > { %152 = sbr.rel (%p2258_p6) target bundleno = 23 (0x17), region = 28 }
   0xf   : > { %155 = sbr.rel (!%p30_p4) target bundleno = 23 (0x17), region = 32  ;;  %s157_s24 = sand.u32 (%p30_p4), 1, %s2595_s16  }
  0x10   : > { %s2260_s25 = sshll.u32 (%p30_p4), %s2599_s17, 2  ;;  %s2259_s26 = sshll.u32 (%p30_p4), %s157_s24, 4 }
  0x11   : > { %s161_s29 = scalar_lea.vmem (%p30_p4), %s3232_s0, %s2260_s25  ;;  %s159_s30 = scalar_lea.vmem (%p30_p4), [#allocation3], %s2259_s26 }
  0x12   : > { %v178_v0 = vld [vmem:[%s161_s29] sm:$0xf] (%p30_p4)  ;;  %v180_v1 = vld [vmem:[%s161_s29 + $0x8] sm:$0xf] (%p30_p4)  ;;  %v182_v2 = vld [vmem:[%s161_s29 + $0x10] sm:$0xf] (%p30_p4) }
  0x13   : > { %179 = vst [vmem:[%s159_s30] sm:$0xf] (%p30_p4), %v178_v0  ;;  %v184_v3 = vld [vmem:[%s161_s29 + $0x18] sm:$0xf] (%p30_p4) }
  0x14   : > { %181 = vst [vmem:[%s159_s30 + $0x4] sm:$0xf] %v180_v1 }
  0x15   : > { %183 = vst [vmem:[%s159_s30 + $0x8] sm:$0xf] %v182_v2 }
  0x16   : > { %185 = vst [vmem:[%s159_s30 + $0xc] sm:$0xf] %v184_v3 }
  0x17 PF: > { %p2261_p7 = scmp.ge.s32.totalorder %s2599_s17, 1  ;;  %p216_p8 = scmp.lt.s32.totalorder %s2599_s17, 3 }
  0x19   : > { %p217_p9 = pnand %p2261_p7, %p216_p8 }
  0x1a   : > { %s223_s5 = sand.u32 (!%p217_p9), 1, %s2591_s15  }
  0x1b   : > { %220 = sbr.rel (%p217_p9) target bundleno = 1335 (0x537), region = 73  ;;  %s2262_s6 = sshll.u32 (!%p217_p9), %s223_s5, 4 }
  0x1c   : > { %s2674_s7 = scalar_lea.vmem (!%p217_p9), [#allocation3], %s2262_s6  ;;  %s2263_s12 = sshll.u32 (!%p217_p9), %s223_s5, 6 }
  0x1d   : > { %s3187_s15 = scalar_lea.vmem (!%p217_p9), [#allocation4], %s2263_s12 }
  0x20   : > { %v2601_v4 = vmov 1983009808   ;;  %v249_v6 = vld [vmem:[%s2674_s7] sm:$0xf]  ;;  %v250_v7 = vld [vmem:[%s2674_s7 + $0x4] sm:$0xf] }
  0x21   : > { %v267_v5 = vunpack.c.l.s4 %v2601_v4  ;;  %v251_v8 = vld [vmem:[%s2674_s7 + $0x8] sm:$0xf]  ;;  %v2602_v10 = vmov 1934713408   ;;  %v252_v12 = vld [vmem:[%s2674_s7 + $0xc] sm:$0xf]  ;;  %v255_v13 = vpack.i.b16 %v250_v7, %v249_v6 }
  0x22   : > { %v281_v11 = vunpack.c.l.s4 %v2602_v10  ;;  %v256_v14 = vshrl.u32 %v249_v6, 16  ;;  %v257_v15 = vshrl.u32 %v250_v7, 16  ;;  %v262_v16 = vshrl.u32 %v251_v8, 16  ;;  %v248_v42 = vld [vmem:[%s3234_s2] sm:$0xf]  ;;  %v2461_v43 = vld [vmem:[%s3233_s1 + $0x38] sm:$0xff] }
  0x23   : > { %v2679_v9 = vunpack.c.0.s8 %v267_v5  ;;  %v261_v17 = vpack.i.b16 %v252_v12, %v251_v8  ;;  %v263_v18 = vshrl.u32 %v252_v12, 16  ;;  %vm276_vm0 = vcmask 1047556   ;;  %v2460_v55 = vld [vmem:[%s3233_s1 + $0x30] sm:$0xff]  ;;  %v2459_v57 = vld [vmem:[%s3233_s1 + $0x28] sm:$0xff]  ;;  %v2458_v58 = vld [vmem:[%s3233_s1 + $0x20] sm:$0xff]  ;;  %s2451_s5 = sshll.u32 (%p2659_p5), %s2255_s18, 3 }
  0x24   : > { %v258_v20 = vpack.i.b16 %v257_v15, %v256_v14  ;;  %v2684_v23 = vunpack.c.0.s8 %v281_v11  ;;  %vm367_vm1 = vcmask 1041408   ;;  %vm363_vm2 = vcmask 31744   ;;  %v2457_v59 = vld [vmem:[%s3233_s1 + $0x18] sm:$0xff]  ;;  %v2456_v60 = vld [vmem:[%s3233_s1 + $0x10] sm:$0xff]  ;;  %v2455_v61 = vld [vmem:[%s3233_s1 + $0x8] sm:$0xff]  ;;  %s2137_s20 = scalar_lea.vmem (%p2659_p5), %s3236_s4, %s2451_s5 }
  0x25   : > { %v269_v19 = vperm.slane %v255_v13, %v2679_v9  ;;  %v274_v21 = vperm.slane %v261_v17, %v2679_v9  ;;  %v264_v22 = vpack.i.b16 %v263_v18, %v262_v16  ;;  %v2454_v62 = vld [vmem:[%s3233_s1] sm:$0xff]  ;;  %v2463_v0 = vld [vmem:[%s2674_s7 + $0x8] sm:$0xff]  ;;  %v2603_v1 = vmov 0.0  }
  0x26   : > { %v296_v25 = vperm.slane %v258_v20, %v2679_v9  ;;  %v2462_v63 = vld [vmem:[%s2674_s7] sm:$0xff]  ;;  %v324_v2 = vperm.slane %v2603_v1, %v2679_v9  ;;  %vm864_vm3 = vcmask 1043456   ;;  %vm860_vm4 = vcmask 64512  }
  0x27   : > { %v278_v24 = vrot.slane %v269_v19, 4  ;;  %v275_v26 = vrot.slane %v274_v21, 4  ;;  %v301_v27 = vperm.slane %v264_v22, %v2679_v9 }
  0x28   : > { %v304_v29 = vrot.slane %v296_v25, 4  ;;  %v329_v3 = vrot.slane %v324_v2, 4 }
  0x29   : > { %v279_v28 = vsel %vm276_vm0, %v274_v21, %v278_v24  ;;  %v277_v30 = vsel %vm276_vm0, %v275_v26, %v269_v19  ;;  %v302_v32 = vrot.slane %v301_v27, 4 }
  0x2a   : > { %v287_v31 = vperm.slane %v279_v28, %v2684_v23  ;;  %v283_v33 = vperm.slane %v277_v30, %v2684_v23  ;;  %v305_v34 = vsel %vm276_vm0, %v301_v27, %v304_v29  ;;  %v330_v4 = vsel %vm276_vm0, %v329_v3, %v324_v2 }
  0x2b   : > { %v303_v36 = vsel %vm276_vm0, %v302_v32, %v296_v25  ;;  %v313_v38 = vperm.slane %v305_v34, %v2684_v23  ;;  %v335_v5 = vperm.slane %v330_v4, %v2684_v23  ;;  %v331_v6 = vsel %vm276_vm0, %v324_v2, %v329_v3 }
  0x2c   : > { %v381_v35 = vsel %vm367_vm1, %v287_v31, 0  ;;  %v290_v37 = vrot.slane %v287_v31, 4  ;;  %v369_v39 = vsel %vm367_vm1, %v283_v33, 0  ;;  %v288_v40 = vrot.slane %v283_v33, 4 }
  0x2d   : > { %v309_v41 = vperm.slane %v303_v36, %v2684_v23  ;;  %399 = vmatpush.bf16.msra.mxu0 %v369_v39  ;;  %v316_v45 = vrot.slane %v313_v38, 4  ;;  %v384_v56 = vsel %vm367_vm1, %v313_v38, 0  ;;  %v351_v7 = vrot.slane %v335_v5, 4 }
  0x2e   : > { %v291_v44 = vsel %vm276_vm0, 0, %v290_v37  ;;  %v289_v46 = vsel %vm276_vm0, 0, %v288_v40  ;;  %v339_v8 = vperm.slane %v331_v6, %v2684_v23 }
  0x2f   : > { %v314_v47 = vrot.slane %v309_v41, 4  ;;  %v372_v48 = vsel %vm367_vm1, %v309_v41, 0  ;;  %v387_v49 = vsel %vm367_vm1, %v291_v44, 0  ;;  %v375_v50 = vsel %vm367_vm1, %v289_v46, 0 }
  0x30   : > { %412 = vmatpush.bf16.msra.mxu1 %v372_v48  ;;  %v317_v51 = vsel %vm276_vm0, 0, %v316_v45  ;;  %2264 = vmatmul.msk.bf16.vlgmr.msra.gmra.mxu0 %vm363_vm2, %v248_v42  ;;  %v2751_v12 = vsel %vm276_vm0, %v351_v7, %v335_v5  ;;  %v2754_v13 = vsel %vm276_vm0, %v335_v5, %v351_v7  ;;  %v354_v14 = vrot.slane %v339_v8, 4 }
  0x31   : > { %451 = vmatpush.bf16.msrb.mxu0 %v381_v35  ;;  %425 = vmatpush.bf16.msra.mxu2 %v375_v50  ;;  %v315_v52 = vsel %vm276_vm0, 0, %v314_v47  ;;  %v390_v53 = vsel %vm367_vm1, %v317_v51, 0 }
  0x32   : > { %v378_v54 = vsel %vm367_vm1, %v315_v52, 0  ;;  %v2759_v17 = vsel %vm276_vm0, %v354_v14, %v339_v8  ;;  %v2762_v20 = vsel %vm276_vm0, %v339_v8, %v354_v14 }
  0x33   : > { %438 = vmatpush.bf16.msra.mxu3 %v378_v54  ;;  %2265 = vmatmul.msk.bf16.vlgmr.msra.gmra.mxu1 %vm363_vm2, %v248_v42 }
  0x34   : > { %2266 = vmatmul.msk.bf16.vlgmr.msra.gmra.mxu2 %vm363_vm2, %v248_v42  ;;  %464 = vmatpush.bf16.msrb.mxu1 %v384_v56 }
  0x35   : > { %696 = vmatpush.bf16.msra.mxu0 %v2461_v43  ;;  %477 = vmatpush.bf16.msrb.mxu2 %v387_v49 }
  0x36   : > { %2267 = vmatmul.msk.bf16.vlgmr.msra.gmra.mxu3 %vm363_vm2, %v248_v42 }
  0x37   : > { %490 = vmatpush.bf16.msrb.mxu3 %v390_v53 }
  0x38   : > { %735 = vmatpush.bf16.msra.mxu1 %v2461_v43 }
  0x39   : > { %697 = vmatpush.bf16.msra.mxu0 %v2460_v55 }
  0x3c   : > { %736 = vmatpush.bf16.msra.mxu1 %v2460_v55 }
  0x3d   : > { %698 = vmatpush.bf16.msra.mxu0 %v2459_v57 }
  0x40   : > { %737 = vmatpush.bf16.msra.mxu1 %v2459_v57  ;;  %2268 = vmatmul.msk.bf16.vlgmr.msrb.gmra.mxu0 %vm363_vm2, %v248_v42 }
  0x41   : > { %699 = vmatpush.bf16.msra.mxu0 %v2458_v58 }
  0x43   : > { %2269 = vmatmul.msk.bf16.vlgmr.msrb.gmra.mxu1 %vm363_vm2, %v248_v42 }
  0x44   : > { %2270 = vmatmul.msk.bf16.vlgmr.msrb.gmra.mxu2 %vm363_vm2, %v248_v42  ;;  %738 = vmatpush.bf16.msra.mxu1 %v2458_v58 }
  0x45   : > { %700 = vmatpush.bf16.msra.mxu0 %v2457_v59 }
  0x46   : > { %2271 = vmatmul.msk.bf16.vlgmr.msrb.gmra.mxu3 %vm363_vm2, %v248_v42 }
  0x48   : > { %739 = vmatpush.bf16.msra.mxu1 %v2457_v59 }
  0x49   : > { %701 = vmatpush.bf16.msra.mxu0 %v2456_v60 }
  0x4c   : > { %740 = vmatpush.bf16.msra.mxu1 %v2456_v60 }
  0x4d   : > { %702 = vmatpush.bf16.msra.mxu0 %v2455_v61 }
  0x50   : > { %741 = vmatpush.bf16.msra.mxu1 %v2455_v61 }
  0x51   : > { %703 = vmatpush.bf16.msra.mxu0 %v2454_v62 }
  0x54   : > { %704 = vmatmul.bf16.vlgmr.msra.gmra.mxu0 %v2462_v63  ;;  %742 = vmatpush.bf16.msra.mxu1 %v2454_v62 }
  0x64   : > { %709 = vmatmul.bf16.gmra.mxu0 %v2463_v0 }
  0xad   : > { %v401_v10 = vpop.f32.mrf.mxu0 }
  0xae   : > { %v402_v15 = vadd.f32 %v401_v10, %v2751_v12 }
  0xb0   : > { %v414_v11 = vpop.f32.mrf.mxu1  ;;  %v498_v21 = vrot.slane %v402_v15, 4 }
  0xb1   : > { %v415_v16 = vadd.f32 %v414_v11, %v2754_v13 }
  0xb3   : > { %v510_v22 = vrot.slane %v415_v16, 4 }
  0xb5   : > { %v403_v18 = vpop.f32.mrf.mxu0 }
  0xb7   : > { %v427_v19 = vpop.f32.mrf.mxu2 }
  0xb8   : > { %v428_v24 = vadd.f32 %v427_v19, %v2759_v17  ;;  %v416_v25 = vpop.f32.mrf.mxu1 }
  0xb9   : > { %v440_v26 = vpop.f32.mrf.mxu3 }
  0xba   : > { %v496_v27 = vrot.slane %v428_v24, 4  ;;  %v499_v28 = vsel %vm276_vm0, %v428_v24, %v498_v21  ;;  %v441_v29 = vadd.f32 %v440_v26, %v2762_v20 }
  0xbb   : > { %v507_v30 = vperm.slane %v499_v28, %v2679_v9 }
  0xbc   : > { %v497_v31 = vsel %vm276_vm0, %v496_v27, %v402_v15  ;;  %v508_v32 = vrot.slane %v441_v29, 4  ;;  %v511_v33 = vsel %vm276_vm0, %v441_v29, %v510_v22 }
  0xbd   : > { %v503_v34 = vperm.slane %v497_v31, %v2679_v9  ;;  %v558_v35 = vrot.slane %v507_v30, 4  ;;  %v519_v36 = vperm.slane %v511_v33, %v2679_v9  ;;  %v453_v38 = vpop.f32.mrf.mxu0 }
  0xbe   : > { %v509_v37 = vsel %vm276_vm0, %v508_v32, %v415_v16  ;;  %v454_v50 = vadd.f32 %v453_v38, %v2751_v12 }
  0xbf   : > { %v546_v39 = vrot.slane %v503_v34, 4  ;;  %v515_v40 = vperm.slane %v509_v37, %v2679_v9  ;;  %v556_v41 = vrot.slane %v519_v36, 4  ;;  %v559_v42 = vsel %vm276_vm0, %v519_v36, %v558_v35  ;;  %v429_v43 = vpop.f32.mrf.mxu2 }
  0xc0   : > { %v466_v44 = vpop.f32.mrf.mxu1  ;;  %v522_v54 = vrot.slane %v454_v50, 4  ;;  %v567_v63 = vperm.slane %v559_v42, %v2684_v23 }
  0xc1   : > { %v544_v45 = vrot.slane %v515_v40, 4  ;;  %v547_v46 = vsel %vm276_vm0, %v515_v40, %v546_v39  ;;  %v557_v47 = vsel %vm276_vm0, %v556_v41, %v507_v30  ;;  %v442_v48 = vpop.f32.mrf.mxu3  ;;  %v467_v51 = vadd.f32 %v466_v44, %v2754_v13 }
  0xc2   : > { %v555_v3 = vperm.slane %v547_v46, %v2684_v23  ;;  %v563_v8 = vperm.slane %v557_v47, %v2684_v23  ;;  %v606_v21 = vrot.slane %v567_v63, 4 }
  0xc3   : > { %v545_v49 = vsel %vm276_vm0, %v544_v45, %v503_v34  ;;  %v534_v55 = vrot.slane %v467_v51, 4 }
  0xc4   : > { %v551_v7 = vperm.slane %v545_v49, %v2684_v23  ;;  %v598_v24 = vrot.slane %v555_v3, 4  ;;  %v602_v34 = vrot.slane %v563_v8, 4 }
  0xc5   : > { %v455_v52 = vpop.f32.mrf.mxu0 }
  0xc6   : > { %v594_v33 = vrot.slane %v551_v7, 4 }
  0xc7   : > { %v479_v53 = vpop.f32.mrf.mxu2 }
  0xc8   : > { %v480_v56 = vadd.f32 %v479_v53, %v2759_v17  ;;  %v468_v57 = vpop.f32.mrf.mxu1 }
  0xc9   : > { %v492_v58 = vpop.f32.mrf.mxu3 }
  0xca   : > { %v520_v59 = vrot.slane %v480_v56, 4  ;;  %v523_v60 = vsel %vm276_vm0, %v480_v56, %v522_v54  ;;  %v493_v61 = vadd.f32 %v492_v58, %v2762_v20 }
  0xcb   : > { %v531_v62 = vperm.slane %v523_v60, %v2679_v9 }
  0xcc   : > { %v521_v0 = vsel %vm276_vm0, %v520_v59, %v454_v50  ;;  %v532_v1 = vrot.slane %v493_v61, 4  ;;  %v535_v2 = vsel %vm276_vm0, %v493_v61, %v534_v55 }
  0xcd   : > { %v527_v4 = vperm.slane %v521_v0, %v2679_v9  ;;  %v582_v5 = vrot.slane %v531_v62, 4  ;;  %v543_v6 = vperm.slane %v535_v2, %v2679_v9 }
  0xce   : > { %v533_v10 = vsel %vm276_vm0, %v532_v1, %v467_v51 }
  0xcf   : > { %v570_v14 = vrot.slane %v527_v4, 4  ;;  %v539_v15 = vperm.slane %v533_v10, %v2679_v9  ;;  %v580_v16 = vrot.slane %v543_v6, 4  ;;  %v583_v18 = vsel %vm276_vm0, %v543_v6, %v582_v5  ;;  %v481_v19 = vpop.f32.mrf.mxu2 }
  0xd0   : > { %v591_v22 = vperm.slane %v583_v18, %v2684_v23 }
  0xd1   : > { %v705_v11 = vpop.f32.mrf.mxu0  ;;  %v568_v25 = vrot.slane %v539_v15, 4  ;;  %v571_v26 = vsel %vm276_vm0, %v539_v15, %v570_v14  ;;  %v581_v27 = vsel %vm276_vm0, %v580_v16, %v531_v62  ;;  %v494_v28 = vpop.f32.mrf.mxu3 }
  0xd2   : > { %v579_v29 = vperm.slane %v571_v26, %v2684_v23  ;;  %v587_v30 = vperm.slane %v581_v27, %v2684_v23  ;;  %v604_v31 = vrot.slane %v591_v22, 4  ;;  %v2801_v32 = vsel %vm276_vm0, %v591_v22, %v606_v21 }
  0xd3   : > { %v569_v35 = vsel %vm276_vm0, %v568_v25, %v527_v4  ;;  %v715_v42 = vpack.c.bf16 %v705_v11, %v705_v11 }
  0xd4   : > { %v575_v36 = vperm.slane %v569_v35, %v2684_v23  ;;  %v596_v37 = vrot.slane %v579_v29, 4  ;;  %v2806_v38 = vsel %vm276_vm0, %v579_v29, %v598_v24  ;;  %v600_v39 = vrot.slane %v587_v30, 4 }
  0xd5   : > { %v2809_v40 = vsel %vm276_vm0, %v587_v30, %v602_v34  ;;  %v2812_v41 = vsel %vm276_vm0, %v604_v31, %v567_v63  ;;  %v727_v51 = vunpack.c.l.b16 %v715_v42 }
  0xd6   : > { %v592_v43 = vrot.slane %v575_v36, 4  ;;  %v2815_v44 = vsel %vm276_vm0, %v575_v36, %v594_v33  ;;  %v2818_v45 = vsel %vm276_vm0, %v596_v37, %v555_v3  ;;  %v2821_v46 = vsel %vm276_vm0, %v600_v39, %v563_v8 }
  0xd8   : > { %v2824_v50 = vsel %vm276_vm0, %v592_v43, %v551_v7 }
  0xd9   : > { %v707_v47 = vpop.f32.mrf.mxu0 }
  0xda   : > { %v716_v48 = vpack.c.bf16 %v707_v47, %v707_v47  ;;  %v2487_v49 = vpack.c.bf16 %v707_v47, %v705_v11 }
  0xdc   : > { %2488 = vst [vmem:[#allocation2] sm:$0xff] %v2487_v49   ;;  %v728_v52 = vunpack.c.l.b16 %v716_v48 }
  0xde   : > { %v731_v53 = vpack.c.b16 %v728_v52, %v727_v51 }
  0xe0   : > { %743 = vmatmul.bf16.vlgmr.msra.gmra.mxu1 %v731_v53 }
  0xe1   : > { %v710_v54 = vpop.f32.mrf.mxu0 }
  0xe2   : > { %v717_v55 = vpack.c.bf16 %v710_v54, %v710_v54 }
  0xe3   : > { %v772_v8 = vld [vmem:[#allocation2] sm:$0xf]  ;;  %v773_v10 = vld [vmem:[#allocation2 + $0x4] sm:$0xf] }
  0xe4   : > { %v729_v59 = vunpack.c.l.b16 %v717_v55 }
  0xe9   : > { %v712_v56 = vpop.f32.mrf.mxu0 }
  0xea   : > { %v718_v57 = vpack.c.bf16 %v712_v56, %v712_v56  ;;  %v2492_v58 = vpack.c.bf16 %v712_v56, %v710_v54 }
  0xec   : > { %2544 = vst [vmem:[#allocation2 + $0x8] sm:$0xff] %v2492_v58   ;;  %v730_v60 = vunpack.c.l.b16 %v718_v57 }
  0xee   : > { %v732_v61 = vpack.c.b16 %v730_v60, %v729_v59 }
  0xf0   : > { %748 = vmatmul.bf16.gmra.mxu1 %v732_v61 }
  0xf3   : > { %v774_v24 = vld [vmem:[#allocation2 + $0x8] sm:$0xf]  ;;  %v775_v25 = vld [vmem:[#allocation2 + $0xc] sm:$0xf] }
 0x15d   : > { %v744_v62 = vpop.f32.mrf.mxu1 }
 0x165   : > { %v746_v63 = vpop.f32.mrf.mxu1 }
 0x166   : > { %v2497_v0 = vpack.c.bf16 %v746_v63, %v744_v62 }
 0x168   : > { %2498 = vst [vmem:[#allocation2 + $0x10] sm:$0xff] %v2497_v0  }
 0x16d   : > { %v749_v1 = vpop.f32.mrf.mxu1 }
 0x16f   : > { %v776_v3 = vld [vmem:[#allocation2 + $0x10] sm:$0xf]  ;;  %v777_v4 = vld [vmem:[#allocation2 + $0x14] sm:$0xf] }
 0x170   : > { %v780_v6 = vrot.slane %v776_v3, 4  ;;  %v808_v7 = vrot.slane %v777_v4, 4  ;;  %v771_v4 = vld [vmem:[%s3235_s3] sm:$0xf] }
 0x172   : > { %v781_v11 = vsel %vm276_vm0, %v780_v6, %v772_v8  ;;  %v809_v14 = vsel %vm276_vm0, %v808_v7, %v773_v10 }
 0x173   : > { %v785_v18 = vperm.slane %v781_v11, %v2679_v9  ;;  %v813_v19 = vperm.slane %v809_v14, %v2679_v9 }
 0x175   : > { %v751_v2 = vpop.f32.mrf.mxu1  ;;  %v794_v29 = vrot.slane %v785_v18, 4  ;;  %v822_v31 = vrot.slane %v813_v19, 4 }
 0x176   : > { %v2502_v5 = vpack.c.bf16 %v751_v2, %v749_v1 }
 0x178   : > { %2545 = vst [vmem:[#allocation2 + $0x18] sm:$0xff] %v2502_v5  }
 0x17f   : > { %v778_v15 = vld [vmem:[#allocation2 + $0x18] sm:$0xf]  ;;  %v779_v16 = vld [vmem:[#allocation2 + $0x1c] sm:$0xf] }
 0x180   : > { %v786_v21 = vrot.slane %v778_v15, 4  ;;  %v814_v22 = vrot.slane %v779_v16, 4 }
 0x182   : > { %v787_v26 = vsel %vm276_vm0, %v786_v21, %v774_v24  ;;  %v815_v27 = vsel %vm276_vm0, %v814_v22, %v775_v25  ;;  %v2471_v25 = vld [vmem:[%s3233_s1 + $0x78] sm:$0xff] }
 0x183   : > { %v791_v28 = vperm.slane %v787_v26, %v2679_v9  ;;  %v819_v30 = vperm.slane %v815_v27, %v2679_v9  ;;  %v2470_v26 = vld [vmem:[%s3233_s1 + $0x70] sm:$0xff]  ;;  %v2469_v27 = vld [vmem:[%s3233_s1 + $0x68] sm:$0xff] }
 0x185   : > { %v792_v33 = vrot.slane %v791_v28, 4  ;;  %v820_v34 = vrot.slane %v819_v30, 4  ;;  %v795_v35 = vsel %vm276_vm0, %v791_v28, %v794_v29  ;;  %v823_v36 = vsel %vm276_vm0, %v819_v30, %v822_v31  ;;  %v2468_v28 = vld [vmem:[%s3233_s1 + $0x60] sm:$0xff]  ;;  %v2467_v29 = vld [vmem:[%s3233_s1 + $0x58] sm:$0xff]  ;;  %v2466_v30 = vld [vmem:[%s3233_s1 + $0x50] sm:$0xff] }
 0x186   : > { %v803_v37 = vperm.slane %v795_v35, %v2684_v23  ;;  %v831_v39 = vperm.slane %v823_v36, %v2684_v23  ;;  %v2465_v31 = vld [vmem:[%s3233_s1 + $0x48] sm:$0xff] }
 0x187   : > { %v793_v42 = vsel %vm276_vm0, %v792_v33, %v785_v18  ;;  %v821_v43 = vsel %vm276_vm0, %v820_v34, %v813_v19  ;;  %v2464_v33 = vld [vmem:[%s3233_s1 + $0x40] sm:$0xff]  ;;  %v2473_v35 = vld [vmem:[%s2674_s7 + $0x8] sm:$0xff] }
 0x188   : > { %v799_v47 = vperm.slane %v793_v42, %v2684_v23  ;;  %v827_v48 = vperm.slane %v821_v43, %v2684_v23  ;;  %v806_v49 = vrot.slane %v803_v37, 4  ;;  %v834_v51 = vrot.slane %v831_v39, 4  ;;  %v2472_v34 = vld [vmem:[%s2674_s7] sm:$0xff] }
 0x189   : > { %v850_v52 = vpack.i.b16 %v831_v39, %v803_v37  ;;  %v851_v53 = vshrl.u32 %v803_v37, 16  ;;  %v852_v1 = vshrl.u32 %v831_v39, 16 }
 0x18a   : > { %v838_v54 = vpack.i.b16 %v827_v48, %v799_v47  ;;  %v807_v55 = vsel %vm276_vm0, 0, %v806_v49  ;;  %v835_v56 = vsel %vm276_vm0, 0, %v834_v51  ;;  %v839_v57 = vshrl.u32 %v799_v47, 16 }
 0x18b   : > { %v856_v58 = vpack.i.b16 %v835_v56, %v807_v55  ;;  %v840_v59 = vshrl.u32 %v827_v48, 16  ;;  %v804_v60 = vrot.slane %v799_v47, 4  ;;  %v832_v61 = vrot.slane %v827_v48, 4 }
 0x18c   : > { %v866_v62 = vsel %vm864_vm3, %v838_v54, 0  ;;  %v857_v63 = vshrl.u32 %v807_v55, 16  ;;  %v858_v0 = vshrl.u32 %v835_v56, 16  ;;  %v853_v19 = vpack.i.b16 %v852_v1, %v851_v53 }
 0x18d   : > { %896 = vmatpush.bf16.msra.mxu2 %v866_v62  ;;  %v884_v2 = vsel %vm864_vm3, %v856_v58, 0  ;;  %v841_v3 = vpack.i.b16 %v840_v59, %v839_v57  ;;  %v805_v5 = vsel %vm276_vm0, 0, %v804_v60  ;;  %v833_v6 = vsel %vm276_vm0, 0, %v832_v61 }
 0x18e   : > { %974 = vmatpush.bf16.msrb.mxu0 %v884_v2  ;;  %v844_v7 = vpack.i.b16 %v833_v6, %v805_v5  ;;  %v859_v8 = vpack.i.b16 %v858_v0, %v857_v63  ;;  %v845_v10 = vshrl.u32 %v805_v5, 16  ;;  %v846_v11 = vshrl.u32 %v833_v6, 16 }
 0x18f   : > { %v869_v14 = vsel %vm864_vm3, %v841_v3, 0  ;;  %v878_v21 = vsel %vm864_vm3, %v850_v52, 0  ;;  %v881_v24 = vsel %vm864_vm3, %v853_v19, 0 }
 0x190   : > { %909 = vmatpush.bf16.msra.mxu3 %v869_v14  ;;  %2312 = vmatmul.msk.bf16.vlgmr.msra.gmra.mxu2 %vm860_vm4, %v771_v4  ;;  %v872_v15 = vsel %vm864_vm3, %v844_v7, 0  ;;  %v887_v16 = vsel %vm864_vm3, %v859_v8, 0  ;;  %v847_v18 = vpack.i.b16 %v846_v11, %v845_v10 }
 0x191   : > { %922 = vmatpush.bf16.msrb.mxu2 %v872_v15  ;;  %987 = vmatpush.bf16.msrb.mxu1 %v887_v16 }
 0x192   : > { %v875_v22 = vsel %vm864_vm3, %v847_v18, 0  ;;  %2318 = vmatmul.msk.bf16.vlgmr.msrb.gmra.mxu0 %vm860_vm4, %v771_v4 }
 0x193   : > { %2313 = vmatmul.msk.bf16.vlgmr.msra.gmra.mxu3 %vm860_vm4, %v771_v4 }
 0x194   : > { %935 = vmatpush.bf16.msrb.mxu3 %v875_v22  ;;  %2319 = vmatmul.msk.bf16.vlgmr.msrb.gmra.mxu1 %vm860_vm4, %v771_v4 }
 0x195   : > { %948 = vmatpush.bf16.msra.mxu2 %v878_v21 }
 0x198   : > { %961 = vmatpush.bf16.msra.mxu3 %v881_v24 }
 0x1a0   : > { %2314 = vmatmul.msk.bf16.vlgmr.msrb.gmra.mxu2 %vm860_vm4, %v771_v4 }
 0x1a1   : > { %1202 = vmatpush.bf16.msrb.mxu2 %v2471_v25 }
 0x1a3   : > { %2315 = vmatmul.msk.bf16.vlgmr.msrb.gmra.mxu3 %vm860_vm4, %v771_v4 }
 0x1a4   : > { %1241 = vmatpush.bf16.msrb.mxu3 %v2471_v25 }
 0x1a5   : > { %1203 = vmatpush.bf16.msrb.mxu2 %v2470_v26 }
 0x1a8   : > { %1242 = vmatpush.bf16.msrb.mxu3 %v2470_v26 }
 0x1a9   : > { %1204 = vmatpush.bf16.msrb.mxu2 %v2469_v27 }
 0x1ac   : > { %1243 = vmatpush.bf16.msrb.mxu3 %v2469_v27 }
 0x1ad   : > { %1205 = vmatpush.bf16.msrb.mxu2 %v2468_v28 }
 0x1b0   : > { %2316 = vmatmul.msk.bf16.vlgmr.msra.gmra.mxu2 %vm860_vm4, %v771_v4  ;;  %1244 = vmatpush.bf16.msrb.mxu3 %v2468_v28 }
 0x1b1   : > { %1206 = vmatpush.bf16.msrb.mxu2 %v2467_v29 }
 0x1b3   : > { %2317 = vmatmul.msk.bf16.vlgmr.msra.gmra.mxu3 %vm860_vm4, %v771_v4 }
 0x1b4   : > { %1245 = vmatpush.bf16.msrb.mxu3 %v2467_v29 }
 0x1b5   : > { %1207 = vmatpush.bf16.msrb.mxu2 %v2466_v30 }
 0x1b8   : > { %1246 = vmatpush.bf16.msrb.mxu3 %v2466_v30 }
 0x1b9   : > { %1208 = vmatpush.bf16.msrb.mxu2 %v2465_v31 }
 0x1bc   : > { %1247 = vmatpush.bf16.msrb.mxu3 %v2465_v31 }
 0x1bd   : > { %1209 = vmatpush.bf16.msrb.mxu2 %v2464_v33 }
 0x1c0   : > { %1210 = vmatmul.bf16.vlgmr.msrb.gmra.mxu2 %v2472_v34  ;;  %1248 = vmatpush.bf16.msrb.mxu3 %v2464_v33 }
 0x1d0   : > { %1215 = vmatmul.bf16.gmra.mxu2 %v2473_v35 }
 0x20f   : > { %v976_v37 = vpop.f32.mrf.mxu0 }
 0x210   : > { %v977_v18 = vadd.f32 %v976_v37, %v2759_v17 }
 0x211   : > { %v989_v42 = vpop.f32.mrf.mxu1 }
 0x212   : > { %v990_v21 = vadd.f32 %v989_v42, %v2762_v20  ;;  %v1017_v22 = vrot.slane %v977_v18, 4 }
 0x213   : > { %v898_v36 = vpop.f32.mrf.mxu2 }
 0x214   : > { %v899_v49 = vadd.f32 %v898_v36, %v2751_v12  ;;  %v1029_v26 = vrot.slane %v990_v21, 4 }
 0x216   : > { %v911_v39 = vpop.f32.mrf.mxu3  ;;  %v995_v54 = vrot.slane %v899_v49, 4 }
 0x217   : > { %v978_v47 = vpop.f32.mrf.mxu0  ;;  %v912_v52 = vadd.f32 %v911_v39, %v2754_v13 }
 0x219   : > { %v991_v51 = vpop.f32.mrf.mxu1  ;;  %v1007_v56 = vrot.slane %v912_v52, 4 }
 0x21b   : > { %v900_v43 = vpop.f32.mrf.mxu2 }
 0x21e   : > { %v913_v48 = vpop.f32.mrf.mxu3 }
 0x223   : > { %v924_v53 = vpop.f32.mrf.mxu2 }
 0x224   : > { %v925_v55 = vadd.f32 %v924_v53, %v2759_v17 }
 0x226   : > { %v993_v57 = vrot.slane %v925_v55, 4  ;;  %v996_v58 = vsel %vm276_vm0, %v925_v55, %v995_v54  ;;  %v937_v59 = vpop.f32.mrf.mxu3 }
 0x227   : > { %v1004_v60 = vperm.slane %v996_v58, %v2679_v9  ;;  %v938_v61 = vadd.f32 %v937_v59, %v2762_v20 }
 0x228   : > { %v994_v62 = vsel %vm276_vm0, %v993_v57, %v899_v49 }
 0x229   : > { %v1000_v63 = vperm.slane %v994_v62, %v2679_v9  ;;  %v1055_v0 = vrot.slane %v1004_v60, 4  ;;  %v1005_v1 = vrot.slane %v938_v61, 4  ;;  %v1008_v2 = vsel %vm276_vm0, %v938_v61, %v1007_v56 }
 0x22a   : > { %v1016_v3 = vperm.slane %v1008_v2, %v2679_v9 }
 0x22b   : > { %v1043_v4 = vrot.slane %v1000_v63, 4  ;;  %v1006_v5 = vsel %vm276_vm0, %v1005_v1, %v912_v52  ;;  %v926_v6 = vpop.f32.mrf.mxu2 }
 0x22c   : > { %v1012_v7 = vperm.slane %v1006_v5, %v2679_v9  ;;  %v1053_v8 = vrot.slane %v1016_v3, 4  ;;  %v1056_v10 = vsel %vm276_vm0, %v1016_v3, %v1055_v0 }
 0x22d   : > { %v1064_v47 = vperm.slane %v1056_v10, %v2684_v23 }
 0x22e   : > { %v1041_v11 = vrot.slane %v1012_v7, 4  ;;  %v1044_v14 = vsel %vm276_vm0, %v1012_v7, %v1043_v4  ;;  %v1054_v15 = vsel %vm276_vm0, %v1053_v8, %v1004_v60  ;;  %v939_v16 = vpop.f32.mrf.mxu3 }
 0x22f   : > { %v1052_v33 = vperm.slane %v1044_v14, %v2684_v23  ;;  %v1060_v52 = vperm.slane %v1054_v15, %v2684_v23  ;;  %v1103_v4 = vrot.slane %v1064_v47, 4 }
 0x230   : > { %v1042_v19 = vsel %vm276_vm0, %v1041_v11, %v1000_v63 }
 0x231   : > { %v1048_v42 = vperm.slane %v1042_v19, %v2684_v23  ;;  %v1095_v56 = vrot.slane %v1052_v33, 4  ;;  %v1099_v3 = vrot.slane %v1060_v52, 4 }
 0x233   : > { %v950_v24 = vpop.f32.mrf.mxu2  ;;  %v1091_v58 = vrot.slane %v1048_v42, 4 }
 0x234   : > { %v951_v25 = vadd.f32 %v950_v24, %v2751_v12 }
 0x236   : > { %v1018_v27 = vsel %vm276_vm0, %v1017_v22, %v951_v25  ;;  %v1019_v28 = vrot.slane %v951_v25, 4  ;;  %v963_v29 = vpop.f32.mrf.mxu3 }
 0x237   : > { %v1024_v30 = vperm.slane %v1018_v27, %v2679_v9  ;;  %v964_v31 = vadd.f32 %v963_v29, %v2754_v13 }
 0x238   : > { %v1020_v34 = vsel %vm276_vm0, %v977_v18, %v1019_v28 }
 0x239   : > { %v1028_v35 = vperm.slane %v1020_v34, %v2679_v9  ;;  %v1067_v36 = vrot.slane %v1024_v30, 4  ;;  %v1030_v37 = vsel %vm276_vm0, %v1029_v26, %v964_v31  ;;  %v1031_v39 = vrot.slane %v964_v31, 4 }
 0x23a   : > { %v1036_v43 = vperm.slane %v1030_v37, %v2679_v9 }
 0x23b   : > { %v1079_v48 = vrot.slane %v1028_v35, 4  ;;  %v1032_v49 = vsel %vm276_vm0, %v990_v21, %v1031_v39  ;;  %v952_v51 = vpop.f32.mrf.mxu2 }
 0x23c   : > { %v1040_v53 = vperm.slane %v1032_v49, %v2679_v9  ;;  %v1065_v54 = vrot.slane %v1036_v43, 4  ;;  %v1068_v55 = vsel %vm276_vm0, %v1036_v43, %v1067_v36 }
 0x23d   : > { %v1076_v57 = vperm.slane %v1068_v55, %v2684_v23 }
 0x23e   : > { %v1066_v59 = vsel %vm276_vm0, %v1065_v54, %v1024_v30  ;;  %v1077_v60 = vrot.slane %v1040_v53, 4  ;;  %v1080_v61 = vsel %vm276_vm0, %v1040_v53, %v1079_v48  ;;  %v965_v62 = vpop.f32.mrf.mxu3 }
 0x23f   : > { %v1072_v63 = vperm.slane %v1066_v59, %v2684_v23  ;;  %v1088_v0 = vperm.slane %v1080_v61, %v2684_v23  ;;  %v1093_v1 = vrot.slane %v1076_v57, 4  ;;  %v1096_v2 = vsel %vm276_vm0, %v1076_v57, %v1095_v56 }
 0x240   : > { %v1078_v5 = vsel %vm276_vm0, %v1077_v60, %v1028_v35  ;;  %v2932_v6 = vadd.f32 %v1096_v2, %v2806_v38 }
 0x241   : > { %v1084_v7 = vperm.slane %v1078_v5, %v2684_v23  ;;  %v1089_v8 = vrot.slane %v1072_v63, 4  ;;  %v1092_v10 = vsel %vm276_vm0, %v1072_v63, %v1091_v58  ;;  %v1094_v11 = vsel %vm276_vm0, %v1093_v1, %v1052_v33 }
 0x242   : > { %v1101_v14 = vrot.slane %v1088_v0, 4  ;;  %v1104_v15 = vsel %vm276_vm0, %v1088_v0, %v1103_v4  ;;  %v2939_v16 = vadd.f32 %v1092_v10, %v2815_v44  ;;  %v2942_v18 = vadd.f32 %v1094_v11, %v2818_v45 }
 0x243   : > { %v1090_v19 = vsel %vm276_vm0, %v1089_v8, %v1048_v42  ;;  %v1097_v38 = vrot.slane %v1084_v7, 4  ;;  %v1100_v21 = vsel %vm276_vm0, %v1084_v7, %v1099_v3  ;;  %v2947_v22 = vadd.f32 %v1104_v15, %v2801_v32  ;;  %v1211_v24 = vpop.f32.mrf.mxu2 }
 0x244   : > { %v1102_v25 = vsel %vm276_vm0, %v1101_v14, %v1064_v47  ;;  %v2951_v26 = vadd.f32 %v1090_v19, %v2824_v50  ;;  %v2954_v44 = vadd.f32 %v1100_v21, %v2809_v40  ;;  %v1221_v29 = vpack.c.bf16 %v1211_v24, %v1211_v24 }
 0x245   : > { %v1098_v45 = vsel %vm276_vm0, %v1097_v38, %v1060_v52  ;;  %v2958_v27 = vadd.f32 %v1102_v25, %v2812_v41 }
 0x246   : > { %v2961_v28 = vadd.f32 %v1098_v45, %v2821_v46  ;;  %v1233_v33 = vunpack.c.l.b16 %v1221_v29 }
 0x24b   : > { %v1213_v32 = vpop.f32.mrf.mxu2 }
 0x24c   : > { %v1222_v30 = vpack.c.bf16 %v1213_v32, %v1213_v32  ;;  %v2507_v31 = vpack.c.bf16 %v1213_v32, %v1211_v24 }
 0x24e   : > { %2508 = vst [vmem:[#allocation2] sm:$0xff] %v2507_v31   ;;  %v1234_v34 = vunpack.c.l.b16 %v1222_v30 }
 0x250   : > { %v1237_v50 = vpack.c.b16 %v1234_v34, %v1233_v33 }
 0x252   : > { %1249 = vmatmul.bf16.vlgmr.msrb.gmra.mxu3 %v1237_v50 }
 0x253   : > { %v1216_v35 = vpop.f32.mrf.mxu2 }
 0x254   : > { %v1223_v40 = vpack.c.bf16 %v1216_v35, %v1216_v35 }
 0x255   : > { %v1278_v57 = vld [vmem:[#allocation2] sm:$0xf]  ;;  %v1279_v58 = vld [vmem:[#allocation2 + $0x4] sm:$0xf] }
 0x256   : > { %v1235_v42 = vunpack.c.l.b16 %v1223_v40 }
 0x25b   : > { %v1218_v36 = vpop.f32.mrf.mxu2 }
 0x25c   : > { %v1224_v37 = vpack.c.bf16 %v1218_v36, %v1218_v36  ;;  %v2512_v39 = vpack.c.bf16 %v1218_v36, %v1216_v35 }
 0x25e   : > { %2546 = vst [vmem:[#allocation2 + $0x8] sm:$0xff] %v2512_v39   ;;  %v1236_v41 = vunpack.c.l.b16 %v1224_v37 }
 0x260   : > { %v1238_v43 = vpack.c.b16 %v1236_v41, %v1235_v42 }
 0x262   : > { %1254 = vmatmul.bf16.gmra.mxu3 %v1238_v43 }
 0x265   : > { %v1280_v3 = vld [vmem:[#allocation2 + $0x8] sm:$0xf]  ;;  %v1281_v4 = vld [vmem:[#allocation2 + $0xc] sm:$0xf] }
 0x2d5   : > { %v1250_v46 = vpop.f32.mrf.mxu3 }
 0x2dd   : > { %v1252_v47 = vpop.f32.mrf.mxu3 }
 0x2de   : > { %v2517_v48 = vpack.c.bf16 %v1252_v47, %v1250_v46 }
 0x2e0   : > { %2518 = vst [vmem:[#allocation2 + $0x10] sm:$0xff] %v2517_v48  }
 0x2e5   : > { %v1255_v49 = vpop.f32.mrf.mxu3 }
 0x2e7   : > { %v1282_v52 = vld [vmem:[#allocation2 + $0x10] sm:$0xf]  ;;  %v1283_v53 = vld [vmem:[#allocation2 + $0x14] sm:$0xf] }
 0x2e8   : > { %v1286_v55 = vrot.slane %v1282_v52, 4  ;;  %v1314_v56 = vrot.slane %v1283_v53, 4  ;;  %v2376_v53 = vld [vmem:[%s3235_s3 + $0x4] sm:$0xf] }
 0x2ea   : > { %v1287_v59 = vsel %vm276_vm0, %v1286_v55, %v1278_v57  ;;  %v1315_v60 = vsel %vm276_vm0, %v1314_v56, %v1279_v58 }
 0x2eb   : > { %v1291_v63 = vperm.slane %v1287_v59, %v2679_v9  ;;  %v1319_v0 = vperm.slane %v1315_v60, %v2679_v9 }
 0x2ed   : > { %v1257_v51 = vpop.f32.mrf.mxu3  ;;  %v1300_v10 = vrot.slane %v1291_v63, 4  ;;  %v1328_v14 = vrot.slane %v1319_v0, 4 }
 0x2ee   : > { %v2522_v54 = vpack.c.bf16 %v1257_v51, %v1255_v49 }
 0x2f0   : > { %2547 = vst [vmem:[#allocation2 + $0x18] sm:$0xff] %v2522_v54  }
 0x2f7   : > { %v1284_v61 = vld [vmem:[#allocation2 + $0x18] sm:$0xf]  ;;  %v1285_v62 = vld [vmem:[#allocation2 + $0x1c] sm:$0xf] }
 0x2f8   : > { %v1292_v1 = vrot.slane %v1284_v61, 4  ;;  %v1320_v2 = vrot.slane %v1285_v62, 4 }
 0x2fa   : > { %v1293_v5 = vsel %vm276_vm0, %v1292_v1, %v1280_v3  ;;  %v1321_v7 = vsel %vm276_vm0, %v1320_v2, %v1281_v4  ;;  %v2481_v4 = vld [vmem:[%s3233_s1 + $0xb8] sm:$0xff] }
 0x2fb   : > { %v1297_v8 = vperm.slane %v1293_v5, %v2679_v9  ;;  %v1325_v11 = vperm.slane %v1321_v7, %v2679_v9  ;;  %v2480_v5 = vld [vmem:[%s3233_s1 + $0xb0] sm:$0xff]  ;;  %v2479_v7 = vld [vmem:[%s3233_s1 + $0xa8] sm:$0xff] }
 0x2fd   : > { %v1298_v15 = vrot.slane %v1297_v8, 4  ;;  %v1326_v19 = vrot.slane %v1325_v11, 4  ;;  %v1301_v38 = vsel %vm276_vm0, %v1297_v8, %v1300_v10  ;;  %v1329_v21 = vsel %vm276_vm0, %v1325_v11, %v1328_v14  ;;  %v2478_v8 = vld [vmem:[%s3233_s1 + $0xa0] sm:$0xff]  ;;  %v2477_v10 = vld [vmem:[%s3233_s1 + $0x98] sm:$0xff]  ;;  %v2476_v11 = vld [vmem:[%s3233_s1 + $0x90] sm:$0xff] }
 0x2fe   : > { %v1309_v24 = vperm.slane %v1301_v38, %v2684_v23  ;;  %v1337_v25 = vperm.slane %v1329_v21, %v2684_v23  ;;  %v2475_v14 = vld [vmem:[%s3233_s1 + $0x88] sm:$0xff] }
 0x2ff   : > { %v1299_v45 = vsel %vm276_vm0, %v1298_v15, %v1291_v63  ;;  %v1327_v29 = vsel %vm276_vm0, %v1326_v19, %v1319_v0  ;;  %v2474_v15 = vld [vmem:[%s3233_s1 + $0x80] sm:$0xff]  ;;  %v2483_v38 = vld [vmem:[%s2674_s7 + $0x8] sm:$0xff] }
 0x300   : > { %v1305_v32 = vperm.slane %v1299_v45, %v2684_v23  ;;  %v1333_v30 = vperm.slane %v1327_v29, %v2684_v23  ;;  %v1312_v31 = vrot.slane %v1309_v24, 4  ;;  %v1340_v33 = vrot.slane %v1337_v25, 4  ;;  %v2482_v19 = vld [vmem:[%s2674_s7] sm:$0xff] }
 0x301   : > { %v1356_v34 = vpack.i.b16 %v1337_v25, %v1309_v24  ;;  %v1357_v50 = vshrl.u32 %v1309_v24, 16  ;;  %v1358_v49 = vshrl.u32 %v1337_v25, 16 }
 0x302   : > { %v1344_v35 = vpack.i.b16 %v1333_v30, %v1305_v32  ;;  %v1313_v40 = vsel %vm276_vm0, 0, %v1312_v31  ;;  %v1341_v36 = vsel %vm276_vm0, 0, %v1340_v33  ;;  %v1345_v37 = vshrl.u32 %v1305_v32, 16 }
 0x303   : > { %v1362_v39 = vpack.i.b16 %v1341_v36, %v1313_v40  ;;  %v1346_v42 = vshrl.u32 %v1333_v30, 16  ;;  %v1310_v41 = vrot.slane %v1305_v32, 4  ;;  %v1338_v43 = vrot.slane %v1333_v30, 4 }
 0x304   : > { %v1370_v46 = vsel %vm864_vm3, %v1344_v35, 0  ;;  %v1363_v47 = vshrl.u32 %v1313_v40, 16  ;;  %v1364_v48 = vshrl.u32 %v1341_v36, 16  ;;  %v1359_v0 = vpack.i.b16 %v1358_v49, %v1357_v50 }
 0x305   : > { %1400 = vmatpush.bf16.msra.mxu0 %v1370_v46  ;;  %v1388_v51 = vsel %vm864_vm3, %v1362_v39, 0  ;;  %v1347_v52 = vpack.i.b16 %v1346_v42, %v1345_v37  ;;  %v1311_v54 = vsel %vm276_vm0, 0, %v1310_v41  ;;  %v1339_v55 = vsel %vm276_vm0, 0, %v1338_v43 }
 0x306   : > { %1478 = vmatpush.bf16.msra.mxu2 %v1388_v51  ;;  %v1350_v56 = vpack.i.b16 %v1339_v55, %v1311_v54  ;;  %v1365_v57 = vpack.i.b16 %v1364_v48, %v1363_v47  ;;  %v1351_v58 = vshrl.u32 %v1311_v54, 16  ;;  %v1352_v59 = vshrl.u32 %v1339_v55, 16 }
 0x307   : > { %v1373_v60 = vsel %vm864_vm3, %v1347_v52, 0  ;;  %v1382_v1 = vsel %vm864_vm3, %v1356_v34, 0  ;;  %v1385_v3 = vsel %vm864_vm3, %v1359_v0, 0 }
 0x308   : > { %1413 = vmatpush.bf16.msra.mxu1 %v1373_v60  ;;  %2377 = vmatmul.msk.bf16.vlgmr.msra.gmra.mxu0 %vm860_vm4, %v2376_v53  ;;  %v1376_v61 = vsel %vm864_vm3, %v1350_v56, 0  ;;  %v1391_v62 = vsel %vm864_vm3, %v1365_v57, 0  ;;  %v1353_v63 = vpack.i.b16 %v1352_v59, %v1351_v58 }
 0x309   : > { %1426 = vmatpush.bf16.msrb.mxu0 %v1376_v61  ;;  %1491 = vmatpush.bf16.msra.mxu3 %v1391_v62 }
 0x30a   : > { %v1379_v2 = vsel %vm864_vm3, %v1353_v63, 0  ;;  %2383 = vmatmul.msk.bf16.vlgmr.msra.gmra.mxu2 %vm860_vm4, %v2376_v53 }
 0x30b   : > { %2378 = vmatmul.msk.bf16.vlgmr.msra.gmra.mxu1 %vm860_vm4, %v2376_v53 }
 0x30c   : > { %1439 = vmatpush.bf16.msrb.mxu1 %v1379_v2  ;;  %2384 = vmatmul.msk.bf16.vlgmr.msra.gmra.mxu3 %vm860_vm4, %v2376_v53 }
 0x30d   : > { %1452 = vmatpush.bf16.msra.mxu0 %v1382_v1 }
 0x310   : > { %1465 = vmatpush.bf16.msra.mxu1 %v1385_v3 }
 0x318   : > { %2379 = vmatmul.msk.bf16.vlgmr.msrb.gmra.mxu0 %vm860_vm4, %v2376_v53 }
 0x319   : > { %1706 = vmatpush.bf16.msrb.mxu0 %v2481_v4 }
 0x31b   : > { %2380 = vmatmul.msk.bf16.vlgmr.msrb.gmra.mxu1 %vm860_vm4, %v2376_v53 }
 0x31c   : > { %1745 = vmatpush.bf16.msrb.mxu1 %v2481_v4 }
 0x31d   : > { %1707 = vmatpush.bf16.msrb.mxu0 %v2480_v5 }
 0x320   : > { %1746 = vmatpush.bf16.msrb.mxu1 %v2480_v5 }
 0x321   : > { %1708 = vmatpush.bf16.msrb.mxu0 %v2479_v7 }
 0x324   : > { %1747 = vmatpush.bf16.msrb.mxu1 %v2479_v7 }
 0x325   : > { %1709 = vmatpush.bf16.msrb.mxu0 %v2478_v8 }
 0x328   : > { %2381 = vmatmul.msk.bf16.vlgmr.msra.gmra.mxu0 %vm860_vm4, %v2376_v53  ;;  %1748 = vmatpush.bf16.msrb.mxu1 %v2478_v8 }
 0x329   : > { %1710 = vmatpush.bf16.msrb.mxu0 %v2477_v10 }
 0x32b   : > { %2382 = vmatmul.msk.bf16.vlgmr.msra.gmra.mxu1 %vm860_vm4, %v2376_v53 }
 0x32c   : > { %1749 = vmatpush.bf16.msrb.mxu1 %v2477_v10 }
 0x32d   : > { %1711 = vmatpush.bf16.msrb.mxu0 %v2476_v11 }
 0x330   : > { %1750 = vmatpush.bf16.msrb.mxu1 %v2476_v11 }
 0x331   : > { %1712 = vmatpush.bf16.msrb.mxu0 %v2475_v14 }
 0x334   : > { %1751 = vmatpush.bf16.msrb.mxu1 %v2475_v14 }
 0x335   : > { %1713 = vmatpush.bf16.msrb.mxu0 %v2474_v15 }
 0x338   : > { %1714 = vmatmul.bf16.vlgmr.msrb.gmra.mxu0 %v2482_v19  ;;  %1752 = vmatpush.bf16.msrb.mxu1 %v2474_v15 }
 0x348   : > { %1719 = vmatmul.bf16.gmra.mxu0 %v2483_v38 }
 0x385   : > { %v1402_v21 = vpop.f32.mrf.mxu0 }
 0x386   : > { %v1403_v30 = vadd.f32 %v1402_v21, %v2751_v12 }
 0x388   : > { %v1415_v24 = vpop.f32.mrf.mxu1  ;;  %v1499_v50 = vrot.slane %v1403_v30, 4 }
 0x389   : > { %v1416_v31 = vadd.f32 %v1415_v24, %v2754_v13 }
 0x38b   : > { %v1511_v40 = vrot.slane %v1416_v31, 4 }
 0x38d   : > { %v1404_v25 = vpop.f32.mrf.mxu0  ;;  %v1480_v45 = vpop.f32.mrf.mxu2 }
 0x38e   : > { %v1481_v63 = vadd.f32 %v1480_v45, %v2759_v17 }
 0x38f   : > { %v1493_v29 = vpop.f32.mrf.mxu3 }
 0x390   : > { %v1417_v32 = vpop.f32.mrf.mxu1  ;;  %v1494_v1 = vadd.f32 %v1493_v29, %v2762_v20  ;;  %v1521_v2 = vrot.slane %v1481_v63, 4 }
 0x392   : > { %v1533_v5 = vrot.slane %v1494_v1, 4 }
 0x395   : > { %v1428_v33 = vpop.f32.mrf.mxu0  ;;  %v1482_v34 = vpop.f32.mrf.mxu2 }
 0x396   : > { %v1429_v35 = vadd.f32 %v1428_v33, %v2759_v17 }
 0x397   : > { %v1495_v36 = vpop.f32.mrf.mxu3 }
 0x398   : > { %v1497_v37 = vrot.slane %v1429_v35, 4  ;;  %v1500_v39 = vsel %vm276_vm0, %v1429_v35, %v1499_v50  ;;  %v1441_v42 = vpop.f32.mrf.mxu1 }
 0x399   : > { %v1508_v41 = vperm.slane %v1500_v39, %v2679_v9  ;;  %v1442_v43 = vadd.f32 %v1441_v42, %v2762_v20 }
 0x39a   : > { %v1498_v46 = vsel %vm276_vm0, %v1497_v37, %v1403_v30 }
 0x39b   : > { %v1504_v47 = vperm.slane %v1498_v46, %v2679_v9  ;;  %v1559_v48 = vrot.slane %v1508_v41, 4  ;;  %v1509_v49 = vrot.slane %v1442_v43, 4  ;;  %v1512_v51 = vsel %vm276_vm0, %v1442_v43, %v1511_v40 }
 0x39c   : > { %v1520_v52 = vperm.slane %v1512_v51, %v2679_v9 }
 0x39d   : > { %v1547_v53 = vrot.slane %v1504_v47, 4  ;;  %v1510_v54 = vsel %vm276_vm0, %v1509_v49, %v1416_v31  ;;  %v1430_v55 = vpop.f32.mrf.mxu0 }
 0x39e   : > { %v1516_v56 = vperm.slane %v1510_v54, %v2679_v9  ;;  %v1557_v57 = vrot.slane %v1520_v52, 4  ;;  %v1560_v58 = vsel %vm276_vm0, %v1520_v52, %v1559_v48 }
 0x39f   : > { %v1568_v32 = vperm.slane %v1560_v58, %v2684_v23 }
 0x3a0   : > { %v1545_v59 = vrot.slane %v1516_v56, 4  ;;  %v1548_v60 = vsel %vm276_vm0, %v1516_v56, %v1547_v53  ;;  %v1558_v61 = vsel %vm276_vm0, %v1557_v57, %v1508_v41  ;;  %v1443_v62 = vpop.f32.mrf.mxu1 }
 0x3a1   : > { %v1556_v15 = vperm.slane %v1548_v60, %v2684_v23  ;;  %v1564_v34 = vperm.slane %v1558_v61, %v2684_v23  ;;  %v1607_v53 = vrot.slane %v1568_v32, 4 }
 0x3a2   : > { %v1546_v0 = vsel %vm276_vm0, %v1545_v59, %v1504_v47 }
 0x3a3   : > { %v1552_v45 = vperm.slane %v1546_v0, %v2684_v23  ;;  %v1599_v36 = vrot.slane %v1556_v15, 4  ;;  %v1603_v52 = vrot.slane %v1564_v34, 4 }
 0x3a5   : > { %v1454_v3 = vpop.f32.mrf.mxu0  ;;  %v1595_v39 = vrot.slane %v1552_v45, 4 }
 0x3a6   : > { %v1455_v4 = vadd.f32 %v1454_v3, %v2751_v12 }
 0x3a8   : > { %v1522_v7 = vsel %vm276_vm0, %v1521_v2, %v1455_v4  ;;  %v1523_v8 = vrot.slane %v1455_v4, 4  ;;  %v1467_v10 = vpop.f32.mrf.mxu1 }
 0x3a9   : > { %v1528_v11 = vperm.slane %v1522_v7, %v2679_v9  ;;  %v1468_v14 = vadd.f32 %v1467_v10, %v2754_v13 }
 0x3aa   : > { %v1524_v19 = vsel %vm276_vm0, %v1481_v63, %v1523_v8 }
 0x3ab   : > { %v1532_v38 = vperm.slane %v1524_v19, %v2679_v9  ;;  %v1571_v21 = vrot.slane %v1528_v11, 4  ;;  %v1534_v24 = vsel %vm276_vm0, %v1533_v5, %v1468_v14  ;;  %v1535_v25 = vrot.slane %v1468_v14, 4 }
 0x3ac   : > { %v1540_v29 = vperm.slane %v1534_v24, %v2679_v9 }
 0x3ad   : > { %v1583_v30 = vrot.slane %v1532_v38, 4  ;;  %v1536_v31 = vsel %vm276_vm0, %v1494_v1, %v1535_v25  ;;  %v1456_v33 = vpop.f32.mrf.mxu0 }
 0x3ae   : > { %v1544_v50 = vperm.slane %v1536_v31, %v2679_v9  ;;  %v1569_v35 = vrot.slane %v1540_v29, 4  ;;  %v1572_v40 = vsel %vm276_vm0, %v1540_v29, %v1571_v21 }
 0x3af   : > { %v1580_v37 = vperm.slane %v1572_v40, %v2684_v23 }
 0x3b0   : > { %v1570_v42 = vsel %vm276_vm0, %v1569_v35, %v1528_v11  ;;  %v1581_v41 = vrot.slane %v1544_v50, 4  ;;  %v1584_v43 = vsel %vm276_vm0, %v1544_v50, %v1583_v30  ;;  %v1469_v46 = vpop.f32.mrf.mxu1 }
 0x3b1   : > { %v1576_v47 = vperm.slane %v1570_v42, %v2684_v23  ;;  %v1592_v48 = vperm.slane %v1584_v43, %v2684_v23  ;;  %v1597_v49 = vrot.slane %v1580_v37, 4  ;;  %v1600_v51 = vsel %vm276_vm0, %v1580_v37, %v1599_v36 }
 0x3b2   : > { %v1582_v54 = vsel %vm276_vm0, %v1581_v41, %v1532_v38  ;;  %v3069_v55 = vadd.f32 %v1600_v51, %v2932_v6 }
 0x3b3   : > { %v1588_v56 = vperm.slane %v1582_v54, %v2684_v23  ;;  %v1593_v57 = vrot.slane %v1576_v47, 4  ;;  %v1596_v58 = vsel %vm276_vm0, %v1576_v47, %v1595_v39  ;;  %v1598_v59 = vsel %vm276_vm0, %v1597_v49, %v1556_v15 }
 0x3b4   : > { %v1605_v60 = vrot.slane %v1592_v48, 4  ;;  %v1608_v61 = vsel %vm276_vm0, %v1592_v48, %v1607_v53  ;;  %v3076_v62 = vadd.f32 %v1596_v58, %v2939_v16  ;;  %v3079_v63 = vadd.f32 %v1598_v59, %v2942_v18 }
 0x3b5   : > { %v1594_v0 = vsel %vm276_vm0, %v1593_v57, %v1552_v45  ;;  %v1601_v6 = vrot.slane %v1588_v56, 4  ;;  %v1604_v1 = vsel %vm276_vm0, %v1588_v56, %v1603_v52  ;;  %v3084_v2 = vadd.f32 %v1608_v61, %v2947_v22  ;;  %v1715_v3 = vpop.f32.mrf.mxu0 }
 0x3b6   : > { %v1606_v4 = vsel %vm276_vm0, %v1605_v60, %v1568_v32  ;;  %v3088_v5 = vadd.f32 %v1594_v0, %v2951_v26  ;;  %v3091_v16 = vadd.f32 %v1604_v1, %v2954_v44  ;;  %v1725_v10 = vpack.c.bf16 %v1715_v3, %v1715_v3 }
 0x3b7   : > { %v1602_v18 = vsel %vm276_vm0, %v1601_v6, %v1564_v34  ;;  %v3095_v7 = vadd.f32 %v1606_v4, %v2958_v27 }
 0x3b8   : > { %v3098_v8 = vadd.f32 %v1602_v18, %v2961_v28  ;;  %v1737_v15 = vunpack.c.l.b16 %v1725_v10 }
 0x3bd   : > { %v1717_v22 = vpop.f32.mrf.mxu0 }
 0x3be   : > { %v1726_v11 = vpack.c.bf16 %v1717_v22, %v1717_v22  ;;  %v2527_v14 = vpack.c.bf16 %v1717_v22, %v1715_v3 }
 0x3c0   : > { %2528 = vst [vmem:[#allocation2] sm:$0xff] %v2527_v14   ;;  %v1738_v19 = vunpack.c.l.b16 %v1726_v11 }
 0x3c2   : > { %v1741_v26 = vpack.c.b16 %v1738_v19, %v1737_v15 }
 0x3c4   : > { %1753 = vmatmul.bf16.vlgmr.msrb.gmra.mxu1 %v1741_v26 }
 0x3c5   : > { %v1720_v38 = vpop.f32.mrf.mxu0 }
 0x3c6   : > { %v1727_v44 = vpack.c.bf16 %v1720_v38, %v1720_v38 }
 0x3c7   : > { %v1782_v37 = vld [vmem:[#allocation2] sm:$0xf]  ;;  %v1783_v39 = vld [vmem:[#allocation2 + $0x4] sm:$0xf] }
 0x3c8   : > { %v1739_v45 = vunpack.c.l.b16 %v1727_v44 }
 0x3cd   : > { %v1722_v21 = vpop.f32.mrf.mxu0 }
 0x3ce   : > { %v1728_v24 = vpack.c.bf16 %v1722_v21, %v1722_v21  ;;  %v2532_v25 = vpack.c.bf16 %v1722_v21, %v1720_v38 }
 0x3d0   : > { %2548 = vst [vmem:[#allocation2 + $0x8] sm:$0xff] %v2532_v25   ;;  %v1740_v27 = vunpack.c.l.b16 %v1728_v24 }
 0x3d2   : > { %v1742_v29 = vpack.c.b16 %v1740_v27, %v1739_v45 }
 0x3d4   : > { %1758 = vmatmul.bf16.gmra.mxu1 %v1742_v29 }
 0x3d7   : > { %v1784_v52 = vld [vmem:[#allocation2 + $0x8] sm:$0xf]  ;;  %v1785_v53 = vld [vmem:[#allocation2 + $0xc] sm:$0xf] }
 0x441   : > { %v1754_v28 = vpop.f32.mrf.mxu1 }
 0x449   : > { %v1756_v32 = vpop.f32.mrf.mxu1 }
 0x44a   : > { %v2537_v30 = vpack.c.bf16 %v1756_v32, %v1754_v28 }
 0x44c   : > { %2538 = vst [vmem:[#allocation2 + $0x10] sm:$0xff] %v2537_v30  }
 0x451   : > { %v1759_v31 = vpop.f32.mrf.mxu1 }
 0x453   : > { %v1786_v34 = vld [vmem:[#allocation2 + $0x10] sm:$0xf]  ;;  %v1787_v50 = vld [vmem:[#allocation2 + $0x14] sm:$0xf] }
 0x454   : > { %v1790_v40 = vrot.slane %v1786_v34, 4  ;;  %v1818_v36 = vrot.slane %v1787_v50, 4  ;;  %v2441_v50 = vld [vmem:[%s3235_s3 + $0x8] sm:$0xf] }
 0x456   : > { %v1791_v42 = vsel %vm276_vm0, %v1790_v40, %v1782_v37  ;;  %v1819_v41 = vsel %vm276_vm0, %v1818_v36, %v1783_v39 }
 0x457   : > { %v1795_v47 = vperm.slane %v1791_v42, %v2679_v9  ;;  %v1823_v48 = vperm.slane %v1819_v41, %v2679_v9 }
 0x459   : > { %v1761_v33 = vpop.f32.mrf.mxu1  ;;  %v1804_v58 = vrot.slane %v1795_v47, 4  ;;  %v1832_v60 = vrot.slane %v1823_v48, 4 }
 0x45a   : > { %v2542_v35 = vpack.c.bf16 %v1761_v33, %v1759_v31 }
 0x45c   : > { %2549 = vst [vmem:[#allocation2 + $0x18] sm:$0xff] %v2542_v35  }
 0x463   : > { %v1788_v43 = vld [vmem:[#allocation2 + $0x18] sm:$0xf]  ;;  %v1789_v46 = vld [vmem:[#allocation2 + $0x1c] sm:$0xf] }
 0x464   : > { %v1796_v49 = vrot.slane %v1788_v43, 4  ;;  %v1824_v51 = vrot.slane %v1789_v46, 4 }
 0x466   : > { %v1797_v54 = vsel %vm276_vm0, %v1796_v49, %v1784_v52  ;;  %v1825_v56 = vsel %vm276_vm0, %v1824_v51, %v1785_v53 }
 0x467   : > { %v1801_v57 = vperm.slane %v1797_v54, %v2679_v9  ;;  %v1829_v59 = vperm.slane %v1825_v56, %v2679_v9 }
 0x469   : > { %v1802_v61 = vrot.slane %v1801_v57, 4  ;;  %v1830_v0 = vrot.slane %v1829_v59, 4  ;;  %v1805_v6 = vsel %vm276_vm0, %v1801_v57, %v1804_v58  ;;  %v1833_v1 = vsel %vm276_vm0, %v1829_v59, %v1832_v60 }
 0x46a   : > { %v1813_v3 = vperm.slane %v1805_v6, %v2684_v23  ;;  %v1841_v4 = vperm.slane %v1833_v1, %v2684_v23 }
 0x46b   : > { %v1803_v18 = vsel %vm276_vm0, %v1802_v61, %v1795_v47  ;;  %v1831_v10 = vsel %vm276_vm0, %v1830_v0, %v1823_v48 }
 0x46c   : > { %v1809_v22 = vperm.slane %v1803_v18, %v2684_v23  ;;  %v1837_v11 = vperm.slane %v1831_v10, %v2684_v23  ;;  %v1816_v14 = vrot.slane %v1813_v3, 4  ;;  %v1844_v15 = vrot.slane %v1841_v4, 4 }
 0x46d   : > { %v1860_v19 = vpack.i.b16 %v1841_v4, %v1813_v3  ;;  %v1861_v26 = vshrl.u32 %v1813_v3, 16  ;;  %v1862_v31 = vshrl.u32 %v1841_v4, 16 }
 0x46e   : > { %v1848_v38 = vpack.i.b16 %v1837_v11, %v1809_v22  ;;  %v1817_v44 = vsel %vm276_vm0, 0, %v1816_v14  ;;  %v1845_v21 = vsel %vm276_vm0, 0, %v1844_v15  ;;  %v1849_v24 = vshrl.u32 %v1809_v22, 16 }
 0x46f   : > { %v1866_v25 = vpack.i.b16 %v1845_v21, %v1817_v44  ;;  %v1850_v45 = vshrl.u32 %v1837_v11, 16  ;;  %v1814_v27 = vrot.slane %v1809_v22, 4  ;;  %v1842_v29 = vrot.slane %v1837_v11, 4 }
 0x470   : > { %v1874_v28 = vsel %vm864_vm3, %v1848_v38, 0  ;;  %v1867_v32 = vshrl.u32 %v1817_v44, 16  ;;  %v1868_v30 = vshrl.u32 %v1845_v21, 16  ;;  %v1863_v48 = vpack.i.b16 %v1862_v31, %v1861_v26 }
 0x471   : > { %1904 = vmatpush.bf16.msrb.mxu2 %v1874_v28  ;;  %v1892_v33 = vsel %vm864_vm3, %v1866_v25, 0  ;;  %v1851_v34 = vpack.i.b16 %v1850_v45, %v1849_v24  ;;  %v1815_v35 = vsel %vm276_vm0, 0, %v1814_v27  ;;  %v1843_v40 = vsel %vm276_vm0, 0, %v1842_v29 }
 0x472   : > { %1982 = vmatpush.bf16.msra.mxu0 %v1892_v33  ;;  %v1854_v36 = vpack.i.b16 %v1843_v40, %v1815_v35  ;;  %v1869_v37 = vpack.i.b16 %v1868_v30, %v1867_v32  ;;  %v1855_v39 = vshrl.u32 %v1815_v35, 16  ;;  %v1856_v42 = vshrl.u32 %v1843_v40, 16 }
 0x473   : > { %v1877_v41 = vsel %vm864_vm3, %v1851_v34, 0  ;;  %v1886_v49 = vsel %vm864_vm3, %v1860_v19, 0  ;;  %v1889_v52 = vsel %vm864_vm3, %v1863_v48, 0 }
 0x474   : > { %1917 = vmatpush.bf16.msrb.mxu3 %v1877_v41  ;;  %2442 = vmatmul.msk.bf16.vlgmr.msrb.gmra.mxu2 %vm860_vm4, %v2441_v50  ;;  %v1880_v43 = vsel %vm864_vm3, %v1854_v36, 0  ;;  %v1895_v46 = vsel %vm864_vm3, %v1869_v37, 0  ;;  %v1857_v47 = vpack.i.b16 %v1856_v42, %v1855_v39 }
 0x475   : > { %1930 = vmatpush.bf16.msra.mxu2 %v1880_v43  ;;  %1995 = vmatpush.bf16.msra.mxu1 %v1895_v46 }
 0x476   : > { %v1883_v51 = vsel %vm864_vm3, %v1857_v47, 0  ;;  %2448 = vmatmul.msk.bf16.vlgmr.msra.gmra.mxu0 %vm860_vm4, %v2441_v50 }
 0x477   : > { %2443 = vmatmul.msk.bf16.vlgmr.msrb.gmra.mxu3 %vm860_vm4, %v2441_v50 }
 0x478   : > { %1943 = vmatpush.bf16.msra.mxu3 %v1883_v51  ;;  %2449 = vmatmul.msk.bf16.vlgmr.msra.gmra.mxu1 %vm860_vm4, %v2441_v50 }
 0x479   : > { %1956 = vmatpush.bf16.msrb.mxu2 %v1886_v49 }
 0x47c   : > { %1969 = vmatpush.bf16.msrb.mxu3 %v1889_v52 }
 0x484   : > { %2444 = vmatmul.msk.bf16.vlgmr.msra.gmra.mxu2 %vm860_vm4, %v2441_v50 }
 0x487   : > { %2445 = vmatmul.msk.bf16.vlgmr.msra.gmra.mxu3 %vm860_vm4, %v2441_v50 }
 0x494   : > { %2446 = vmatmul.msk.bf16.vlgmr.msrb.gmra.mxu2 %vm860_vm4, %v2441_v50 }
 0x497   : > { %2447 = vmatmul.msk.bf16.vlgmr.msrb.gmra.mxu3 %vm860_vm4, %v2441_v50 }
 0x4f3   : > { %v1984_v53 = vpop.f32.mrf.mxu0 }
 0x4f4   : > { %v1985_v25 = vadd.f32 %v1984_v53, %v2759_v17 }
 0x4f5   : > { %v1997_v54 = vpop.f32.mrf.mxu1 }
 0x4f6   : > { %v1998_v32 = vadd.f32 %v1997_v54, %v2762_v20  ;;  %v2025_v30 = vrot.slane %v1985_v25, 4 }
 0x4f7   : > { %v1906_v56 = vpop.f32.mrf.mxu2 }
 0x4f8   : > { %v1907_v4 = vadd.f32 %v1906_v56, %v2751_v12  ;;  %v2037_v36 = vrot.slane %v1998_v32, 4 }
 0x4fa   : > { %v1919_v57 = vpop.f32.mrf.mxu3  ;;  %v2003_v14 = vrot.slane %v1907_v4, 4 }
 0x4fb   : > { %v1986_v58 = vpop.f32.mrf.mxu0  ;;  %v1920_v18 = vadd.f32 %v1919_v57, %v2754_v13 }
 0x4fd   : > { %v1999_v59 = vpop.f32.mrf.mxu1  ;;  %v2015_v15 = vrot.slane %v1920_v18, 4 }
 0x4ff   : > { %v1908_v60 = vpop.f32.mrf.mxu2 }
 0x502   : > { %v1921_v61 = vpop.f32.mrf.mxu3 }
 0x507   : > { %v1932_v0 = vpop.f32.mrf.mxu2 }
 0x508   : > { %v1933_v6 = vadd.f32 %v1932_v0, %v2759_v17 }
 0x50a   : > { %v2001_v1 = vrot.slane %v1933_v6, 4  ;;  %v1945_v3 = vpop.f32.mrf.mxu3  ;;  %v2004_v38 = vsel %vm276_vm0, %v1933_v6, %v2003_v14 }
 0x50b   : > { %v1946_v10 = vadd.f32 %v1945_v3, %v2762_v20  ;;  %v2012_v27 = vperm.slane %v2004_v38, %v2679_v9 }
 0x50c   : > { %v2002_v11 = vsel %vm276_vm0, %v2001_v1, %v1907_v4 }
 0x50d   : > { %v2013_v22 = vrot.slane %v1946_v10, 4  ;;  %v2008_v44 = vperm.slane %v2002_v11, %v2679_v9  ;;  %v2016_v21 = vsel %vm276_vm0, %v1946_v10, %v2015_v15  ;;  %v2063_v34 = vrot.slane %v2012_v27, 4 }
 0x50e   : > { %v2024_v29 = vperm.slane %v2016_v21, %v2679_v9 }
 0x50f   : > { %v1934_v19 = vpop.f32.mrf.mxu2  ;;  %v2014_v26 = vsel %vm276_vm0, %v2013_v22, %v1920_v18  ;;  %v2051_v28 = vrot.slane %v2008_v44, 4 }
 0x510   : > { %v2020_v45 = vperm.slane %v2014_v26, %v2679_v9  ;;  %v2061_v50 = vrot.slane %v2024_v29, 4 }
 0x512   : > { %v1947_v24 = vpop.f32.mrf.mxu3  ;;  %v2049_v31 = vrot.slane %v2020_v45, 4  ;;  %v2052_v40 = vsel %vm276_vm0, %v2020_v45, %v2051_v28  ;;  %v2062_v46 = vsel %vm276_vm0, %v2061_v50, %v2012_v27 }
 0x513   : > { %v2060_v43 = vperm.slane %v2052_v40, %v2684_v23  ;;  %v2068_v59 = vperm.slane %v2062_v46, %v2684_v23 }
 0x514   : > { %v2050_v42 = vsel %vm276_vm0, %v2049_v31, %v2008_v44 }
 0x515   : > { %v2056_v53 = vperm.slane %v2050_v42, %v2684_v23  ;;  %v2103_v6 = vrot.slane %v2060_v43, 4  ;;  %v2107_v19 = vrot.slane %v2068_v59, 4 }
 0x517   : > { %v1958_v33 = vpop.f32.mrf.mxu2  ;;  %v2099_v3 = vrot.slane %v2056_v53, 4 }
 0x518   : > { %v1959_v35 = vadd.f32 %v1958_v33, %v2751_v12  ;;  %v2064_v12 = vsel %vm276_vm0, %v2024_v29, %v2063_v34 }
 0x51a   : > { %v2026_v17 = vsel %vm276_vm0, %v2025_v30, %v1959_v35  ;;  %v2027_v37 = vrot.slane %v1959_v35, 4  ;;  %v1971_v39 = vpop.f32.mrf.mxu3 }
 0x51b   : > { %v2032_v41 = vperm.slane %v2026_v17, %v2679_v9  ;;  %v1972_v20 = vadd.f32 %v1971_v39, %v2754_v13  ;;  %v2072_v13 = vperm.slane %v2064_v12, %v2684_v23 }
 0x51c   : > { %v2028_v47 = vsel %vm276_vm0, %v1985_v25, %v2027_v37 }
 0x51d   : > { %v2036_v48 = vperm.slane %v2028_v47, %v2679_v9  ;;  %v2075_v49 = vrot.slane %v2032_v41, 4  ;;  %v2038_v51 = vsel %vm276_vm0, %v2037_v36, %v1972_v20  ;;  %v2039_v52 = vrot.slane %v1972_v20, 4 }
 0x51e   : > { %v2044_v54 = vperm.slane %v2038_v51, %v2679_v9  ;;  %v2111_v26 = vrot.slane %v2072_v13, 4 }
 0x51f   : > { %v2087_v56 = vrot.slane %v2036_v48, 4  ;;  %v2040_v57 = vsel %vm276_vm0, %v1998_v32, %v2039_v52  ;;  %v1960_v58 = vpop.f32.mrf.mxu2 }
 0x520   : > { %v2048_v60 = vperm.slane %v2040_v57, %v2679_v9  ;;  %v2073_v61 = vrot.slane %v2044_v54, 4  ;;  %v2076_v0 = vsel %vm276_vm0, %v2044_v54, %v2075_v49 }
 0x521   : > { %v2084_v1 = vperm.slane %v2076_v0, %v2684_v23 }
 0x522   : > { %v2074_v4 = vsel %vm276_vm0, %v2073_v61, %v2032_v41  ;;  %v2085_v18 = vrot.slane %v2048_v60, 4  ;;  %v2088_v10 = vsel %vm276_vm0, %v2048_v60, %v2087_v56  ;;  %v1973_v22 = vpop.f32.mrf.mxu3 }
 0x523   : > { %v2080_v11 = vperm.slane %v2074_v4, %v2684_v23  ;;  %v2096_v14 = vperm.slane %v2088_v10, %v2684_v23  ;;  %v2101_v15 = vrot.slane %v2084_v1, 4  ;;  %v2104_v9 = vsel %vm276_vm0, %v2084_v1, %v2103_v6 }
 0x524   : > { %v2086_v38 = vsel %vm276_vm0, %v2085_v18, %v2036_v48  ;;  %v2116_v44 = vadd.f32 %v2104_v9, %v3069_v55 }
 0x525   : > { %v2092_v21 = vperm.slane %v2086_v38, %v2684_v23  ;;  %v2097_v24 = vrot.slane %v2080_v11, 4  ;;  %v2100_v25 = vsel %vm276_vm0, %v2080_v11, %v2099_v3  ;;  %v2102_v45 = vsel %vm276_vm0, %v2101_v15, %v2060_v43 }
 0x526   : > { %v2109_v27 = vrot.slane %v2096_v14, 4  ;;  %v2114_v29 = vadd.f32 %v2100_v25, %v3076_v62  ;;  %v2115_v28 = vadd.f32 %v2102_v45, %v3079_v63  ;;  %2124 = vst [vmem:[%s3187_s15 + $0x18] sm:$0xff] %v2116_v44  ;;  %v2112_v62 = vsel %vm276_vm0, %v2096_v14, %v2111_v26 }
 0x527   : > { %v2098_v23 = vsel %vm276_vm0, %v2097_v24, %v2056_v53  ;;  %v2105_v55 = vrot.slane %v2092_v21, 4  ;;  %v2108_v32 = vsel %vm276_vm0, %v2092_v21, %v2107_v19  ;;  %v2120_v35 = vadd.f32 %v2112_v62, %v3084_v2 }
 0x528   : > { %v2110_v63 = vsel %vm276_vm0, %v2109_v27, %v2072_v13  ;;  %v2113_v30 = vadd.f32 %v2098_v23, %v3088_v5  ;;  %v2118_v31 = vadd.f32 %v2108_v32, %v3091_v16  ;;  %2122 = vst [vmem:[%s3187_s15 + $0x8] sm:$0xff] %v2114_v29 }
 0x529   : > { %v2106_v33 = vsel %vm276_vm0, %v2105_v55, %v2068_v59  ;;  %v2119_v34 = vadd.f32 %v2110_v63, %v3095_v7  ;;  %2123 = vst [vmem:[%s3187_s15 + $0x10] sm:$0xff] %v2115_v28 }
 0x52a   : > { %v2117_v50 = vadd.f32 %v2106_v33, %v3098_v8  ;;  %2121 = vst [vmem:[%s3187_s15] sm:$0xff] %v2113_v30  ;;  %2135 = sbr.rel (!%p2659_p5) target bundleno = 1335 (0x537), region = 81 }
 0x52b   : > { %2126 = vst [vmem:[%s3187_s15 + $0x28] sm:$0xff] %v2118_v31 }
 0x52c   : > { %2125 = vst [vmem:[%s3187_s15 + $0x20] sm:$0xff] %v2117_v50 }
 0x52d   : > { %2127 = vst [vmem:[%s3187_s15 + $0x30] sm:$0xff] %v2119_v34  ;;  %v2186_v7 = vld [vmem:[%s3187_s15 + $0x18] sm:$0xff] (%p2659_p5) }
 0x52e   : > { %2128 = vst [vmem:[%s3187_s15 + $0x38] sm:$0xff] %v2120_v35 }
 0x52f   : > { %v2182_v5 = vld [vmem:[%s3187_s15 + $0x8] sm:$0xff]  ;;  %2187 = vst [vmem:[%s2137_s20 + $0x30] sm:$0xff] %v2186_v7 }
 0x530   : > { %v2184_v16 = vld [vmem:[%s3187_s15 + $0x10] sm:$0xff]  ;;  %2183 = vst [vmem:[%s2137_s20 + $0x10] sm:$0xff] %v2182_v5 }
 0x531   : > { %v2180_v2 = vld [vmem:[%s3187_s15] sm:$0xff]  ;;  %2185 = vst [vmem:[%s2137_s20 + $0x20] sm:$0xff] %v2184_v16 }
 0x532   : > { %2181 = vst [vmem:[%s2137_s20] sm:$0xff] %v2180_v2  ;;  %v2190_v40 = vld [vmem:[%s3187_s15 + $0x28] sm:$0xff] }
 0x533   : > { %v2188_v8 = vld [vmem:[%s3187_s15 + $0x20] sm:$0xff]  ;;  %2191 = vst [vmem:[%s2137_s20 + $0x50] sm:$0xff] %v2190_v40 }
 0x534   : > { %v2192_v36 = vld [vmem:[%s3187_s15 + $0x30] sm:$0xff]  ;;  %2189 = vst [vmem:[%s2137_s20 + $0x40] sm:$0xff] %v2188_v8 }
 0x535   : > { %v2194_v17 = vld [vmem:[%s3187_s15 + $0x38] sm:$0xff]  ;;  %2193 = vst [vmem:[%s2137_s20 + $0x60] sm:$0xff] %v2192_v36 }
 0x536   : > { %2195 = vst [vmem:[%s2137_s20 + $0x70] sm:$0xff] %v2194_v17 }
 0x537 PF: > { %p11_p10 = scmp.ge.s32.totalorder %s2646_s19, 4   ;;  %s3238_s15 = smov %s2595_s16 }
 0x538   : > { %s3239_s16 = smov %s2657_s22  ;;  %s3240_s17 = smov %s2646_s19 }
 0x539   :  { %13 = sbr.rel (!%p11_p10) target bundleno = 2 (0x2), region = 155 }

</bundles_post_ra>
